<compile_context>
chip_gen: v7x
topology: tpu7x:2x2x1
jax: 0.10.0
libtpu: 0.0.40
codegen_flags: <defaults>
</compile_context>

<pallas_src>
import jax
import jax.numpy as jnp
import numpy as np
from jax.experimental import pallas as pl
from jax.experimental.pallas import tpu as pltpu


def gru_decoder_kernel(x_ref, wih_ref, whh_ref, b_ref, wfc_ref, bfc_ref,
                       out_ref, hs_ref):
    """Fused GRU unroll (per-gate weights) + single post-loop Linear head.

    x_ref   : (TB, E)        encoder-output block
    wih_ref : (3, E, H)      per-gate W_ih^T, gate order (r, z, n)
    whh_ref : (3, H, H)      per-gate W_hh^T
    b_ref   : (4, H)         rows: [b_ir+b_hr, b_iz+b_hz, b_in, b_hn]
    wfc_ref : (H, Cp)        fc.weight^T, zero-padded to lane-dense Cp
    bfc_ref : (1, Cp)        fc.bias, zero-padded
    out_ref : (TB, T, Cp)    logits (padded class dim)
    hs_ref  : (TB, T, H)     VMEM scratch holding every hidden state h_t
    """
    TB = x_ref.shape[0]
    H = whh_ref.shape[1]
    T = out_ref.shape[1]

    x = x_ref[...]
    b = b_ref[...]

    # Hoist loop-invariant recurrent weights (each read exactly once).
    whr = whh_ref[0]
    whz = whh_ref[1]
    whn = whh_ref[2]

    # The encoder vector is identical at every timestep, so the input-gate
    # pre-activations (with the folded r/z recurrent biases) are computed once.
    gi_r = jnp.dot(x, wih_ref[0], preferred_element_type=jnp.float32) + b[0:1, :]
    gi_z = jnp.dot(x, wih_ref[1], preferred_element_type=jnp.float32) + b[1:2, :]
    gi_n = jnp.dot(x, wih_ref[2], preferred_element_type=jnp.float32) + b[2:3, :]
    # b_hn sits inside r * (.) so it cannot be folded; broadcast it once here.
    b_hn = jnp.broadcast_to(b[3:4, :], (TB, H))

    h = jnp.zeros((TB, H), jnp.float32)
    # seq_len is small and compile-time fixed -> static unroll keeps full LLO
    # scheduling visibility.  (Switch to lax.fori_loop(..., unroll=True) if
    # seq_len grows beyond ~16.)
    for t in range(T):
        gh_r = jnp.dot(h, whr, preferred_element_type=jnp.float32)
        gh_z = jnp.dot(h, whz, preferred_element_type=jnp.float32)
        gh_n = jnp.dot(h, whn, preferred_element_type=jnp.float32) + b_hn
        r = jax.nn.sigmoid(gi_r + gh_r)
        z = jax.nn.sigmoid(gi_z + gh_z)
        n = jnp.tanh(gi_n + r * gh_n)
        h = (1.0 - z) * n + z * h
        hs_ref[:, t, :] = h          # store is off the serial h -> h chain

    # One fused FC matmul + one lane-dense store, after the recurrence.
    hs = hs_ref[...].reshape(TB * T, H)
    logits = jnp.dot(hs, wfc_ref[...],
                     preferred_element_type=jnp.float32) + bfc_ref[...]
    out_ref[...] = logits.reshape(TB, T, out_ref.shape[2])


def digit_sequence_decoder(encoder_output, params, *, seq_len, num_classes):
    """Wrapper: PyTorch-shaped params -> Pallas kernel call."""
    B, E = encoder_output.shape
    w_ih, w_hh = params["w_ih"], params["w_hh"]
    b_ih, b_hh = params["b_ih"], params["b_hh"]
    w_fc, b_fc = params["w_fc"], params["b_fc"]
    H = w_hh.shape[1]

    # Per-gate layout (r, z, n), pre-transposed to (in_dim, out_dim).
    wih_g = w_ih.reshape(3, H, E).transpose(0, 2, 1).astype(jnp.float32)  # (3,E,H)
    whh_g = w_hh.reshape(3, H, H).transpose(0, 2, 1).astype(jnp.float32)  # (3,H,H)

    # Fold b_hr / b_hz into the one-time input pre-activations; keep b_hn apart.
    biases = jnp.stack([b_ih[:H] + b_hh[:H],
                        b_ih[H:2 * H] + b_hh[H:2 * H],
                        b_ih[2 * H:],
                        b_hh[2 * H:]], axis=0).astype(jnp.float32)        # (4,H)

    # Lane-dense FC head: pad class dim to a multiple of 128, slice back after.
    Cp = ((num_classes + 127) // 128) * 128
    wfc = jnp.zeros((H, Cp), jnp.float32).at[:, :num_classes].set(w_fc.T)
    bfc = jnp.zeros((1, Cp), jnp.float32).at[:, :num_classes].set(b_fc)

    # Batch-parallel grid: independent rows, so v7x's two TensorCores both get
    # work at large B; grid=(1,) for small B (no per-step overhead added).
    tb = B if B <= 256 else 256
    assert B % tb == 0, "batch-block size must divide B"
    grid = (B // tb,)

    out = pl.pallas_call(
        gru_decoder_kernel,
        out_shape=jax.ShapeDtypeStruct((B, seq_len, Cp), jnp.float32),
        grid_spec=pltpu.PrefetchScalarGridSpec(
            num_scalar_prefetch=0,
            grid=grid,
            in_specs=[
                pl.BlockSpec((tb, E), lambda i: (i, 0)),
                pl.BlockSpec((3, E, H), lambda i: (0, 0, 0)),
                pl.BlockSpec((3, H, H), lambda i: (0, 0, 0)),
                pl.BlockSpec((4, H), lambda i: (0, 0)),
                pl.BlockSpec((H, Cp), lambda i: (0, 0)),
                pl.BlockSpec((1, Cp), lambda i: (0, 0)),
            ],
            out_specs=pl.BlockSpec((tb, seq_len, Cp), lambda i: (i, 0, 0)),
            scratch_shapes=[pltpu.VMEM((tb, seq_len, H), jnp.float32)],
        ),
        compiler_params=pltpu.CompilerParams(
            dimension_semantics=("parallel",)),
    )(encoder_output, wih_g, whh_g, biases, wfc, bfc)
    return out[..., :num_classes]


def reference_forward(encoder_output, params, *, seq_len):
    """Pure-JAX reference matching PyTorch nn.GRU(batch_first=True) + nn.Linear."""
    w_ih, w_hh = params["w_ih"], params["w_hh"]
    b_ih, b_hh = params["b_ih"], params["b_hh"]
    w_fc, b_fc = params["w_fc"], params["b_fc"]
    H = w_hh.shape[1]
    x = encoder_output
    gi = x @ w_ih.T + b_ih

    def step(h, _):
        gh = h @ w_hh.T + b_hh
        r = jax.nn.sigmoid(gi[:, :H] + gh[:, :H])
        z = jax.nn.sigmoid(gi[:, H:2 * H] + gh[:, H:2 * H])
        n = jnp.tanh(gi[:, 2 * H:] + r * gh[:, 2 * H:])
        h_new = (1.0 - z) * n + z * h
        return h_new, h_new

    h0 = jnp.zeros((x.shape[0], H), jnp.float32)
    _, hs = jax.lax.scan(step, h0, None, length=seq_len)
    hs = jnp.transpose(hs, (1, 0, 2))  # (T, B, H) -> (B, T, H)
    return hs @ w_fc.T + b_fc


def init_params(key, encoder_dim, hidden_dim, num_classes):
    """Deterministic init with PyTorch shapes (uniform +/- 1/sqrt(hidden))."""
    ks = jax.random.split(key, 6)
    stdv = 1.0 / np.sqrt(hidden_dim)
    u = lambda k, shape: jax.random.uniform(k, shape, jnp.float32, -stdv, stdv)
    return {
        "w_ih": u(ks[0], (3 * hidden_dim, encoder_dim)),  # weight_ih_l0
        "w_hh": u(ks[1], (3 * hidden_dim, hidden_dim)),   # weight_hh_l0
        "b_ih": u(ks[2], (3 * hidden_dim,)),              # bias_ih_l0
        "b_hh": u(ks[3], (3 * hidden_dim,)),              # bias_hh_l0
        "w_fc": u(ks[4], (num_classes, hidden_dim)),      # fc.weight
        "b_fc": u(ks[5], (num_classes,)),                 # fc.bias
    }


if __name__ == "__main__":
    B, ENCODER_DIM, HIDDEN_DIM, SEQ_LEN, NUM_CLASSES = 2, 32, 32, 8, 10

    key = jax.random.PRNGKey(0)
    k_x, k_p = jax.random.split(key)
    encoder_output = jax.random.normal(k_x, (B, ENCODER_DIM), dtype=jnp.float32)
    params = init_params(k_p, ENCODER_DIM, HIDDEN_DIM, NUM_CLASSES)

    logits = digit_sequence_decoder(
        encoder_output, params, seq_len=SEQ_LEN, num_classes=NUM_CLASSES)
    logits = jax.block_until_ready(logits)

    ref = reference_forward(encoder_output, params, seq_len=SEQ_LEN)
    assert logits.shape == (B, SEQ_LEN, NUM_CLASSES)
    np.testing.assert_allclose(np.asarray(logits), np.asarray(ref),
                               rtol=1e-5, atol=1e-5)
    print("KERNEL_OK")
</pallas_src>

<mosaic_0001>
module attributes {stable_mosaic.version = 11 : i64} {
  func.func @gru_decoder_kernel(%arg0: i32, %arg1: memref<2x32xf32, #tpu.memory_space<vmem>>, %arg2: memref<3x32x32xf32, #tpu.memory_space<vmem>>, %arg3: memref<3x32x32xf32, #tpu.memory_space<vmem>>, %arg4: memref<4x32xf32, #tpu.memory_space<vmem>>, %arg5: memref<32x128xf32, #tpu.memory_space<vmem>>, %arg6: memref<1x128xf32, #tpu.memory_space<vmem>>, %arg7: memref<2x8x128xf32, #tpu.memory_space<vmem>>, %arg8: memref<2x8x32xf32, #tpu.memory_space<vmem>>) attributes {dimension_semantics = [#tpu.dimension_semantics<parallel>], iteration_bounds = array<i64: 1>, scalar_prefetch = 0 : i64, scratch_operands = 1 : i64, tpu.core_type = #tpu.core_type<tc>, window_params = [{transform_indices = @transform_0, window_bounds = array<i64: 2, 32>}, {pipeline_mode = #tpu.pipeline_mode<synchronous>, transform_indices = @transform_1, window_bounds = array<i64: 3, 32, 32>}, {pipeline_mode = #tpu.pipeline_mode<synchronous>, transform_indices = @transform_2, window_bounds = array<i64: 3, 32, 32>}, {pipeline_mode = #tpu.pipeline_mode<synchronous>, transform_indices = @transform_3, window_bounds = array<i64: 4, 32>}, {pipeline_mode = #tpu.pipeline_mode<synchronous>, transform_indices = @transform_4, window_bounds = array<i64: 32, 128>}, {pipeline_mode = #tpu.pipeline_mode<synchronous>, transform_indices = @transform_5, window_bounds = array<i64: 1, 128>}, {transform_indices = @transform_6, window_bounds = array<i64: 2, 8, 128>}]} {
    %c0 = arith.constant 0 : index
    %c0_0 = arith.constant 0 : index
    %0 = vector.load %arg1[%c0, %c0_0] : memref<2x32xf32, #tpu.memory_space<vmem>>, vector<2x32xf32>
    %c0_1 = arith.constant 0 : index
    %c0_2 = arith.constant 0 : index
    %1 = vector.load %arg4[%c0_1, %c0_2] : memref<4x32xf32, #tpu.memory_space<vmem>>, vector<4x32xf32>
    %c0_3 = arith.constant 0 : index
    %c0_4 = arith.constant 0 : index
    %c0_5 = arith.constant 0 : index
    %2 = vector.load %arg3[%c0_3, %c0_4, %c0_5] : memref<3x32x32xf32, #tpu.memory_space<vmem>>, vector<1x32x32xf32>
    %3 = vector.shape_cast %2 : vector<1x32x32xf32> to vector<32x32xf32>
    %c1 = arith.constant 1 : index
    %c0_6 = arith.constant 0 : index
    %c0_7 = arith.constant 0 : index
    %4 = vector.load %arg3[%c1, %c0_6, %c0_7] : memref<3x32x32xf32, #tpu.memory_space<vmem>>, vector<1x32x32xf32>
    %5 = vector.shape_cast %4 : vector<1x32x32xf32> to vector<32x32xf32>
    %c2 = arith.constant 2 : index
    %c0_8 = arith.constant 0 : index
    %c0_9 = arith.constant 0 : index
    %6 = vector.load %arg3[%c2, %c0_8, %c0_9] : memref<3x32x32xf32, #tpu.memory_space<vmem>>, vector<1x32x32xf32>
    %7 = vector.shape_cast %6 : vector<1x32x32xf32> to vector<32x32xf32>
    %c0_10 = arith.constant 0 : index
    %c0_11 = arith.constant 0 : index
    %c0_12 = arith.constant 0 : index
    %8 = vector.load %arg2[%c0_10, %c0_11, %c0_12] : memref<3x32x32xf32, #tpu.memory_space<vmem>>, vector<1x32x32xf32>
    %9 = vector.shape_cast %8 : vector<1x32x32xf32> to vector<32x32xf32>
    %cst = arith.constant dense<0.000000e+00> : vector<2x32xf32>
    %10 = tpu.matmul %0, %9, %cst {dimension_numbers = #tpu.dot_dimension_numbers<[1], [0], [0], [1], [0, 0, 1, 1], [], []>} : vector<2x32xf32>, vector<32x32xf32>, vector<2x32xf32> -> vector<2x32xf32>
    %11 = vector.extract_strided_slice %1 {offsets = [0, 0], sizes = [1, 32], strides = [1, 1]} : vector<4x32xf32> to vector<1x32xf32>
    %12 = vector.broadcast %11 : vector<1x32xf32> to vector<2x32xf32>
    %13 = arith.addf %10, %12 : vector<2x32xf32>
    %c1_13 = arith.constant 1 : index
    %c0_14 = arith.constant 0 : index
    %c0_15 = arith.constant 0 : index
    %14 = vector.load %arg2[%c1_13, %c0_14, %c0_15] : memref<3x32x32xf32, #tpu.memory_space<vmem>>, vector<1x32x32xf32>
    %15 = vector.shape_cast %14 : vector<1x32x32xf32> to vector<32x32xf32>
    %cst_16 = arith.constant dense<0.000000e+00> : vector<2x32xf32>
    %16 = tpu.matmul %0, %15, %cst_16 {dimension_numbers = #tpu.dot_dimension_numbers<[1], [0], [0], [1], [0, 0, 1, 1], [], []>} : vector<2x32xf32>, vector<32x32xf32>, vector<2x32xf32> -> vector<2x32xf32>
    %17 = vector.extract_strided_slice %1 {offsets = [1, 0], sizes = [1, 32], strides = [1, 1]} : vector<4x32xf32> to vector<1x32xf32>
    %18 = vector.broadcast %17 : vector<1x32xf32> to vector<2x32xf32>
    %19 = arith.addf %16, %18 : vector<2x32xf32>
    %c2_17 = arith.constant 2 : index
    %c0_18 = arith.constant 0 : index
    %c0_19 = arith.constant 0 : index
    %20 = vector.load %arg2[%c2_17, %c0_18, %c0_19] : memref<3x32x32xf32, #tpu.memory_space<vmem>>, vector<1x32x32xf32>
    %21 = vector.shape_cast %20 : vector<1x32x32xf32> to vector<32x32xf32>
    %cst_20 = arith.constant dense<0.000000e+00> : vector<2x32xf32>
    %22 = tpu.matmul %0, %21, %cst_20 {dimension_numbers = #tpu.dot_dimension_numbers<[1], [0], [0], [1], [0, 0, 1, 1], [], []>} : vector<2x32xf32>, vector<32x32xf32>, vector<2x32xf32> -> vector<2x32xf32>
    %23 = vector.extract_strided_slice %1 {offsets = [2, 0], sizes = [1, 32], strides = [1, 1]} : vector<4x32xf32> to vector<1x32xf32>
    %24 = vector.broadcast %23 : vector<1x32xf32> to vector<2x32xf32>
    %25 = arith.addf %22, %24 : vector<2x32xf32>
    %26 = vector.extract_strided_slice %1 {offsets = [3, 0], sizes = [1, 32], strides = [1, 1]} : vector<4x32xf32> to vector<1x32xf32>
    %27 = vector.shape_cast %26 : vector<1x32xf32> to vector<1x32xf32>
    %28 = vector.broadcast %27 : vector<1x32xf32> to vector<2x32xf32>
    %cst_21 = arith.constant 0.000000e+00 : f32
    %29 = vector.broadcast %cst_21 : f32 to vector<2x32xf32>
    %cst_22 = arith.constant dense<0.000000e+00> : vector<2x32xf32>
    %30 = tpu.matmul %29, %3, %cst_22 {dimension_numbers = #tpu.dot_dimension_numbers<[1], [0], [0], [1], [0, 0, 1, 1], [], []>} : vector<2x32xf32>, vector<32x32xf32>, vector<2x32xf32> -> vector<2x32xf32>
    %cst_23 = arith.constant dense<0.000000e+00> : vector<2x32xf32>
    %31 = tpu.matmul %29, %5, %cst_23 {dimension_numbers = #tpu.dot_dimension_numbers<[1], [0], [0], [1], [0, 0, 1, 1], [], []>} : vector<2x32xf32>, vector<32x32xf32>, vector<2x32xf32> -> vector<2x32xf32>
    %cst_24 = arith.constant dense<0.000000e+00> : vector<2x32xf32>
    %32 = tpu.matmul %29, %7, %cst_24 {dimension_numbers = #tpu.dot_dimension_numbers<[1], [0], [0], [1], [0, 0, 1, 1], [], []>} : vector<2x32xf32>, vector<32x32xf32>, vector<2x32xf32> -> vector<2x32xf32>
    %33 = arith.addf %32, %28 : vector<2x32xf32>
    %34 = arith.addf %13, %30 : vector<2x32xf32>
    %35 = arith.negf %34 : vector<2x32xf32>
    %36 = math.exp %35 : vector<2x32xf32>
    %cst_25 = arith.constant 1.000000e+00 : f32
    %37 = vector.broadcast %cst_25 : f32 to vector<2x32xf32>
    %38 = arith.addf %37, %36 : vector<2x32xf32>
    %39 = arith.divf %37, %38 : vector<2x32xf32>
    %40 = arith.addf %19, %31 : vector<2x32xf32>
    %41 = arith.negf %40 : vector<2x32xf32>
    %42 = math.exp %41 : vector<2x32xf32>
    %cst_26 = arith.constant 1.000000e+00 : f32
    %43 = vector.broadcast %cst_26 : f32 to vector<2x32xf32>
    %44 = arith.addf %43, %42 : vector<2x32xf32>
    %45 = arith.divf %43, %44 : vector<2x32xf32>
    %46 = arith.mulf %39, %33 : vector<2x32xf32>
    %47 = arith.addf %25, %46 : vector<2x32xf32>
    %48 = math.tanh %47 : vector<2x32xf32>
    %cst_27 = arith.constant 1.000000e+00 : f32
    %49 = vector.broadcast %cst_27 : f32 to vector<2x32xf32>
    %50 = arith.subf %49, %45 : vector<2x32xf32>
    %51 = arith.mulf %50, %48 : vector<2x32xf32>
    %52 = arith.mulf %45, %29 : vector<2x32xf32>
    %53 = arith.addf %51, %52 : vector<2x32xf32>
    %c0_28 = arith.constant 0 : index
    %c0_29 = arith.constant 0 : index
    %c0_30 = arith.constant 0 : index
    %54 = vector.load %arg8[%c0_28, %c0_29, %c0_30] : memref<2x8x32xf32, #tpu.memory_space<vmem>>, vector<2x1x32xf32>
    %55 = vector.shape_cast %54 : vector<2x1x32xf32> to vector<2x32xf32>
    %56 = vector.shape_cast %53 : vector<2x32xf32> to vector<2x1x32xf32>
    tpu.vector_store %arg8[%c0_28, %c0_29, %c0_30], %56 {strides = array<i32>} : memref<2x8x32xf32, #tpu.memory_space<vmem>>, vector<2x1x32xf32>,
    %cst_31 = arith.constant dense<0.000000e+00> : vector<2x32xf32>
    %57 = tpu.matmul %53, %3, %cst_31 {dimension_numbers = #tpu.dot_dimension_numbers<[1], [0], [0], [1], [0, 0, 1, 1], [], []>} : vector<2x32xf32>, vector<32x32xf32>, vector<2x32xf32> -> vector<2x32xf32>
    %cst_32 = arith.constant dense<0.000000e+00> : vector<2x32xf32>
    %58 = tpu.matmul %53, %5, %cst_32 {dimension_numbers = #tpu.dot_dimension_numbers<[1], [0], [0], [1], [0, 0, 1, 1], [], []>} : vector<2x32xf32>, vector<32x32xf32>, vector<2x32xf32> -> vector<2x32xf32>
    %cst_33 = arith.constant dense<0.000000e+00> : vector<2x32xf32>
    %59 = tpu.matmul %53, %7, %cst_33 {dimension_numbers = #tpu.dot_dimension_numbers<[1], [0], [0], [1], [0, 0, 1, 1], [], []>} : vector<2x32xf32>, vector<32x32xf32>, vector<2x32xf32> -> vector<2x32xf32>
    %60 = arith.addf %59, %28 : vector<2x32xf32>
    %61 = arith.addf %13, %57 : vector<2x32xf32>
    %62 = arith.negf %61 : vector<2x32xf32>
    %63 = math.exp %62 : vector<2x32xf32>
    %cst_34 = arith.constant 1.000000e+00 : f32
    %64 = vector.broadcast %cst_34 : f32 to vector<2x32xf32>
    %65 = arith.addf %64, %63 : vector<2x32xf32>
    %66 = arith.divf %64, %65 : vector<2x32xf32>
    %67 = arith.addf %19, %58 : vector<2x32xf32>
    %68 = arith.negf %67 : vector<2x32xf32>
    %69 = math.exp %68 : vector<2x32xf32>
    %cst_35 = arith.constant 1.000000e+00 : f32
    %70 = vector.broadcast %cst_35 : f32 to vector<2x32xf32>
    %71 = arith.addf %70, %69 : vector<2x32xf32>
    %72 = arith.divf %70, %71 : vector<2x32xf32>
    %73 = arith.mulf %66, %60 : vector<2x32xf32>
    %74 = arith.addf %25, %73 : vector<2x32xf32>
    %75 = math.tanh %74 : vector<2x32xf32>
    %cst_36 = arith.constant 1.000000e+00 : f32
    %76 = vector.broadcast %cst_36 : f32 to vector<2x32xf32>
    %77 = arith.subf %76, %72 : vector<2x32xf32>
    %78 = arith.mulf %77, %75 : vector<2x32xf32>
    %79 = arith.mulf %72, %53 : vector<2x32xf32>
    %80 = arith.addf %78, %79 : vector<2x32xf32>
    %c0_37 = arith.constant 0 : index
    %c1_38 = arith.constant 1 : index
    %c0_39 = arith.constant 0 : index
    %81 = vector.load %arg8[%c0_37, %c1_38, %c0_39] : memref<2x8x32xf32, #tpu.memory_space<vmem>>, vector<2x1x32xf32>
    %82 = vector.shape_cast %81 : vector<2x1x32xf32> to vector<2x32xf32>
    %83 = vector.shape_cast %80 : vector<2x32xf32> to vector<2x1x32xf32>
    tpu.vector_store %arg8[%c0_37, %c1_38, %c0_39], %83 {strides = array<i32>} : memref<2x8x32xf32, #tpu.memory_space<vmem>>, vector<2x1x32xf32>,
    %cst_40 = arith.constant dense<0.000000e+00> : vector<2x32xf32>
    %84 = tpu.matmul %80, %3, %cst_40 {dimension_numbers = #tpu.dot_dimension_numbers<[1], [0], [0], [1], [0, 0, 1, 1], [], []>} : vector<2x32xf32>, vector<32x32xf32>, vector<2x32xf32> -> vector<2x32xf32>
    %cst_41 = arith.constant dense<0.000000e+00> : vector<2x32xf32>
    %85 = tpu.matmul %80, %5, %cst_41 {dimension_numbers = #tpu.dot_dimension_numbers<[1], [0], [0], [1], [0, 0, 1, 1], [], []>} : vector<2x32xf32>, vector<32x32xf32>, vector<2x32xf32> -> vector<2x32xf32>
    %cst_42 = arith.constant dense<0.000000e+00> : vector<2x32xf32>
    %86 = tpu.matmul %80, %7, %cst_42 {dimension_numbers = #tpu.dot_dimension_numbers<[1], [0], [0], [1], [0, 0, 1, 1], [], []>} : vector<2x32xf32>, vector<32x32xf32>, vector<2x32xf32> -> vector<2x32xf32>
    %87 = arith.addf %86, %28 : vector<2x32xf32>
    %88 = arith.addf %13, %84 : vector<2x32xf32>
    %89 = arith.negf %88 : vector<2x32xf32>
    %90 = math.exp %89 : vector<2x32xf32>
    %cst_43 = arith.constant 1.000000e+00 : f32
    %91 = vector.broadcast %cst_43 : f32 to vector<2x32xf32>
    %92 = arith.addf %91, %90 : vector<2x32xf32>
    %93 = arith.divf %91, %92 : vector<2x32xf32>
    %94 = arith.addf %19, %85 : vector<2x32xf32>
    %95 = arith.negf %94 : vector<2x32xf32>
    %96 = math.exp %95 : vector<2x32xf32>
    %cst_44 = arith.constant 1.000000e+00 : f32
    %97 = vector.broadcast %cst_44 : f32 to vector<2x32xf32>
    %98 = arith.addf %97, %96 : vector<2x32xf32>
    %99 = arith.divf %97, %98 : vector<2x32xf32>
    %100 = arith.mulf %93, %87 : vector<2x32xf32>
    %101 = arith.addf %25, %100 : vector<2x32xf32>
    %102 = math.tanh %101 : vector<2x32xf32>
    %cst_45 = arith.constant 1.000000e+00 : f32
    %103 = vector.broadcast %cst_45 : f32 to vector<2x32xf32>
    %104 = arith.subf %103, %99 : vector<2x32xf32>
    %105 = arith.mulf %104, %102 : vector<2x32xf32>
    %106 = arith.mulf %99, %80 : vector<2x32xf32>
    %107 = arith.addf %105, %106 : vector<2x32xf32>
    %c0_46 = arith.constant 0 : index
    %c2_47 = arith.constant 2 : index
    %c0_48 = arith.constant 0 : index
    %108 = vector.load %arg8[%c0_46, %c2_47, %c0_48] : memref<2x8x32xf32, #tpu.memory_space<vmem>>, vector<2x1x32xf32>
    %109 = vector.shape_cast %108 : vector<2x1x32xf32> to vector<2x32xf32>
    %110 = vector.shape_cast %107 : vector<2x32xf32> to vector<2x1x32xf32>
    tpu.vector_store %arg8[%c0_46, %c2_47, %c0_48], %110 {strides = array<i32>} : memref<2x8x32xf32, #tpu.memory_space<vmem>>, vector<2x1x32xf32>,
    %cst_49 = arith.constant dense<0.000000e+00> : vector<2x32xf32>
    %111 = tpu.matmul %107, %3, %cst_49 {dimension_numbers = #tpu.dot_dimension_numbers<[1], [0], [0], [1], [0, 0, 1, 1], [], []>} : vector<2x32xf32>, vector<32x32xf32>, vector<2x32xf32> -> vector<2x32xf32>
    %cst_50 = arith.constant dense<0.000000e+00> : vector<2x32xf32>
    %112 = tpu.matmul %107, %5, %cst_50 {dimension_numbers = #tpu.dot_dimension_numbers<[1], [0], [0], [1], [0, 0, 1, 1], [], []>} : vector<2x32xf32>, vector<32x32xf32>, vector<2x32xf32> -> vector<2x32xf32>
    %cst_51 = arith.constant dense<0.000000e+00> : vector<2x32xf32>
    %113 = tpu.matmul %107, %7, %cst_51 {dimension_numbers = #tpu.dot_dimension_numbers<[1], [0], [0], [1], [0, 0, 1, 1], [], []>} : vector<2x32xf32>, vector<32x32xf32>, vector<2x32xf32> -> vector<2x32xf32>
    %114 = arith.addf %113, %28 : vector<2x32xf32>
    %115 = arith.addf %13, %111 : vector<2x32xf32>
    %116 = arith.negf %115 : vector<2x32xf32>
    %117 = math.exp %116 : vector<2x32xf32>
    %cst_52 = arith.constant 1.000000e+00 : f32
    %118 = vector.broadcast %cst_52 : f32 to vector<2x32xf32>
    %119 = arith.addf %118, %117 : vector<2x32xf32>
    %120 = arith.divf %118, %119 : vector<2x32xf32>
    %121 = arith.addf %19, %112 : vector<2x32xf32>
    %122 = arith.negf %121 : vector<2x32xf32>
    %123 = math.exp %122 : vector<2x32xf32>
    %cst_53 = arith.constant 1.000000e+00 : f32
    %124 = vector.broadcast %cst_53 : f32 to vector<2x32xf32>
    %125 = arith.addf %124, %123 : vector<2x32xf32>
    %126 = arith.divf %124, %125 : vector<2x32xf32>
    %127 = arith.mulf %120, %114 : vector<2x32xf32>
    %128 = arith.addf %25, %127 : vector<2x32xf32>
    %129 = math.tanh %128 : vector<2x32xf32>
    %cst_54 = arith.constant 1.000000e+00 : f32
    %130 = vector.broadcast %cst_54 : f32 to vector<2x32xf32>
    %131 = arith.subf %130, %126 : vector<2x32xf32>
    %132 = arith.mulf %131, %129 : vector<2x32xf32>
    %133 = arith.mulf %126, %107 : vector<2x32xf32>
    %134 = arith.addf %132, %133 : vector<2x32xf32>
    %c0_55 = arith.constant 0 : index
    %c3 = arith.constant 3 : index
    %c0_56 = arith.constant 0 : index
    %135 = vector.load %arg8[%c0_55, %c3, %c0_56] : memref<2x8x32xf32, #tpu.memory_space<vmem>>, vector<2x1x32xf32>
    %136 = vector.shape_cast %135 : vector<2x1x32xf32> to vector<2x32xf32>
    %137 = vector.shape_cast %134 : vector<2x32xf32> to vector<2x1x32xf32>
    tpu.vector_store %arg8[%c0_55, %c3, %c0_56], %137 {strides = array<i32>} : memref<2x8x32xf32, #tpu.memory_space<vmem>>, vector<2x1x32xf32>,
    %cst_57 = arith.constant dense<0.000000e+00> : vector<2x32xf32>
    %138 = tpu.matmul %134, %3, %cst_57 {dimension_numbers = #tpu.dot_dimension_numbers<[1], [0], [0], [1], [0, 0, 1, 1], [], []>} : vector<2x32xf32>, vector<32x32xf32>, vector<2x32xf32> -> vector<2x32xf32>
    %cst_58 = arith.constant dense<0.000000e+00> : vector<2x32xf32>
    %139 = tpu.matmul %134, %5, %cst_58 {dimension_numbers = #tpu.dot_dimension_numbers<[1], [0], [0], [1], [0, 0, 1, 1], [], []>} : vector<2x32xf32>, vector<32x32xf32>, vector<2x32xf32> -> vector<2x32xf32>
    %cst_59 = arith.constant dense<0.000000e+00> : vector<2x32xf32>
    %140 = tpu.matmul %134, %7, %cst_59 {dimension_numbers = #tpu.dot_dimension_numbers<[1], [0], [0], [1], [0, 0, 1, 1], [], []>} : vector<2x32xf32>, vector<32x32xf32>, vector<2x32xf32> -> vector<2x32xf32>
    %141 = arith.addf %140, %28 : vector<2x32xf32>
    %142 = arith.addf %13, %138 : vector<2x32xf32>
    %143 = arith.negf %142 : vector<2x32xf32>
    %144 = math.exp %143 : vector<2x32xf32>
    %cst_60 = arith.constant 1.000000e+00 : f32
    %145 = vector.broadcast %cst_60 : f32 to vector<2x32xf32>
    %146 = arith.addf %145, %144 : vector<2x32xf32>
    %147 = arith.divf %145, %146 : vector<2x32xf32>
    %148 = arith.addf %19, %139 : vector<2x32xf32>
    %149 = arith.negf %148 : vector<2x32xf32>
    %150 = math.exp %149 : vector<2x32xf32>
    %cst_61 = arith.constant 1.000000e+00 : f32
    %151 = vector.broadcast %cst_61 : f32 to vector<2x32xf32>
    %152 = arith.addf %151, %150 : vector<2x32xf32>
    %153 = arith.divf %151, %152 : vector<2x32xf32>
    %154 = arith.mulf %147, %141 : vector<2x32xf32>
    %155 = arith.addf %25, %154 : vector<2x32xf32>
    %156 = math.tanh %155 : vector<2x32xf32>
    %cst_62 = arith.constant 1.000000e+00 : f32
    %157 = vector.broadcast %cst_62 : f32 to vector<2x32xf32>
    %158 = arith.subf %157, %153 : vector<2x32xf32>
    %159 = arith.mulf %158, %156 : vector<2x32xf32>
    %160 = arith.mulf %153, %134 : vector<2x32xf32>
    %161 = arith.addf %159, %160 : vector<2x32xf32>
    %c0_63 = arith.constant 0 : index
    %c4 = arith.constant 4 : index
    %c0_64 = arith.constant 0 : index
    %162 = vector.load %arg8[%c0_63, %c4, %c0_64] : memref<2x8x32xf32, #tpu.memory_space<vmem>>, vector<2x1x32xf32>
    %163 = vector.shape_cast %162 : vector<2x1x32xf32> to vector<2x32xf32>
    %164 = vector.shape_cast %161 : vector<2x32xf32> to vector<2x1x32xf32>
    tpu.vector_store %arg8[%c0_63, %c4, %c0_64], %164 {strides = array<i32>} : memref<2x8x32xf32, #tpu.memory_space<vmem>>, vector<2x1x32xf32>,
    %cst_65 = arith.constant dense<0.000000e+00> : vector<2x32xf32>
    %165 = tpu.matmul %161, %3, %cst_65 {dimension_numbers = #tpu.dot_dimension_numbers<[1], [0], [0], [1], [0, 0, 1, 1], [], []>} : vector<2x32xf32>, vector<32x32xf32>, vector<2x32xf32> -> vector<2x32xf32>
    %cst_66 = arith.constant dense<0.000000e+00> : vector<2x32xf32>
    %166 = tpu.matmul %161, %5, %cst_66 {dimension_numbers = #tpu.dot_dimension_numbers<[1], [0], [0], [1], [0, 0, 1, 1], [], []>} : vector<2x32xf32>, vector<32x32xf32>, vector<2x32xf32> -> vector<2x32xf32>
    %cst_67 = arith.constant dense<0.000000e+00> : vector<2x32xf32>
    %167 = tpu.matmul %161, %7, %cst_67 {dimension_numbers = #tpu.dot_dimension_numbers<[1], [0], [0], [1], [0, 0, 1, 1], [], []>} : vector<2x32xf32>, vector<32x32xf32>, vector<2x32xf32> -> vector<2x32xf32>
    %168 = arith.addf %167, %28 : vector<2x32xf32>
    %169 = arith.addf %13, %165 : vector<2x32xf32>
    %170 = arith.negf %169 : vector<2x32xf32>
    %171 = math.exp %170 : vector<2x32xf32>
    %cst_68 = arith.constant 1.000000e+00 : f32
    %172 = vector.broadcast %cst_68 : f32 to vector<2x32xf32>
    %173 = arith.addf %172, %171 : vector<2x32xf32>
    %174 = arith.divf %172, %173 : vector<2x32xf32>
    %175 = arith.addf %19, %166 : vector<2x32xf32>
    %176 = arith.negf %175 : vector<2x32xf32>
    %177 = math.exp %176 : vector<2x32xf32>
    %cst_69 = arith.constant 1.000000e+00 : f32
    %178 = vector.broadcast %cst_69 : f32 to vector<2x32xf32>
    %179 = arith.addf %178, %177 : vector<2x32xf32>
    %180 = arith.divf %178, %179 : vector<2x32xf32>
    %181 = arith.mulf %174, %168 : vector<2x32xf32>
    %182 = arith.addf %25, %181 : vector<2x32xf32>
    %183 = math.tanh %182 : vector<2x32xf32>
    %cst_70 = arith.constant 1.000000e+00 : f32
    %184 = vector.broadcast %cst_70 : f32 to vector<2x32xf32>
    %185 = arith.subf %184, %180 : vector<2x32xf32>
    %186 = arith.mulf %185, %183 : vector<2x32xf32>
    %187 = arith.mulf %180, %161 : vector<2x32xf32>
    %188 = arith.addf %186, %187 : vector<2x32xf32>
    %c0_71 = arith.constant 0 : index
    %c5 = arith.constant 5 : index
    %c0_72 = arith.constant 0 : index
    %189 = vector.load %arg8[%c0_71, %c5, %c0_72] : memref<2x8x32xf32, #tpu.memory_space<vmem>>, vector<2x1x32xf32>
    %190 = vector.shape_cast %189 : vector<2x1x32xf32> to vector<2x32xf32>
    %191 = vector.shape_cast %188 : vector<2x32xf32> to vector<2x1x32xf32>
    tpu.vector_store %arg8[%c0_71, %c5, %c0_72], %191 {strides = array<i32>} : memref<2x8x32xf32, #tpu.memory_space<vmem>>, vector<2x1x32xf32>,
    %cst_73 = arith.constant dense<0.000000e+00> : vector<2x32xf32>
    %192 = tpu.matmul %188, %3, %cst_73 {dimension_numbers = #tpu.dot_dimension_numbers<[1], [0], [0], [1], [0, 0, 1, 1], [], []>} : vector<2x32xf32>, vector<32x32xf32>, vector<2x32xf32> -> vector<2x32xf32>
    %cst_74 = arith.constant dense<0.000000e+00> : vector<2x32xf32>
    %193 = tpu.matmul %188, %5, %cst_74 {dimension_numbers = #tpu.dot_dimension_numbers<[1], [0], [0], [1], [0, 0, 1, 1], [], []>} : vector<2x32xf32>, vector<32x32xf32>, vector<2x32xf32> -> vector<2x32xf32>
    %cst_75 = arith.constant dense<0.000000e+00> : vector<2x32xf32>
    %194 = tpu.matmul %188, %7, %cst_75 {dimension_numbers = #tpu.dot_dimension_numbers<[1], [0], [0], [1], [0, 0, 1, 1], [], []>} : vector<2x32xf32>, vector<32x32xf32>, vector<2x32xf32> -> vector<2x32xf32>
    %195 = arith.addf %194, %28 : vector<2x32xf32>
    %196 = arith.addf %13, %192 : vector<2x32xf32>
    %197 = arith.negf %196 : vector<2x32xf32>
    %198 = math.exp %197 : vector<2x32xf32>
    %cst_76 = arith.constant 1.000000e+00 : f32
    %199 = vector.broadcast %cst_76 : f32 to vector<2x32xf32>
    %200 = arith.addf %199, %198 : vector<2x32xf32>
    %201 = arith.divf %199, %200 : vector<2x32xf32>
    %202 = arith.addf %19, %193 : vector<2x32xf32>
    %203 = arith.negf %202 : vector<2x32xf32>
    %204 = math.exp %203 : vector<2x32xf32>
    %cst_77 = arith.constant 1.000000e+00 : f32
    %205 = vector.broadcast %cst_77 : f32 to vector<2x32xf32>
    %206 = arith.addf %205, %204 : vector<2x32xf32>
    %207 = arith.divf %205, %206 : vector<2x32xf32>
    %208 = arith.mulf %201, %195 : vector<2x32xf32>
    %209 = arith.addf %25, %208 : vector<2x32xf32>
    %210 = math.tanh %209 : vector<2x32xf32>
    %cst_78 = arith.constant 1.000000e+00 : f32
    %211 = vector.broadcast %cst_78 : f32 to vector<2x32xf32>
    %212 = arith.subf %211, %207 : vector<2x32xf32>
    %213 = arith.mulf %212, %210 : vector<2x32xf32>
    %214 = arith.mulf %207, %188 : vector<2x32xf32>
    %215 = arith.addf %213, %214 : vector<2x32xf32>
    %c0_79 = arith.constant 0 : index
    %c6 = arith.constant 6 : index
    %c0_80 = arith.constant 0 : index
    %216 = vector.load %arg8[%c0_79, %c6, %c0_80] : memref<2x8x32xf32, #tpu.memory_space<vmem>>, vector<2x1x32xf32>
    %217 = vector.shape_cast %216 : vector<2x1x32xf32> to vector<2x32xf32>
    %218 = vector.shape_cast %215 : vector<2x32xf32> to vector<2x1x32xf32>
    tpu.vector_store %arg8[%c0_79, %c6, %c0_80], %218 {strides = array<i32>} : memref<2x8x32xf32, #tpu.memory_space<vmem>>, vector<2x1x32xf32>,
    %cst_81 = arith.constant dense<0.000000e+00> : vector<2x32xf32>
    %219 = tpu.matmul %215, %3, %cst_81 {dimension_numbers = #tpu.dot_dimension_numbers<[1], [0], [0], [1], [0, 0, 1, 1], [], []>} : vector<2x32xf32>, vector<32x32xf32>, vector<2x32xf32> -> vector<2x32xf32>
    %cst_82 = arith.constant dense<0.000000e+00> : vector<2x32xf32>
    %220 = tpu.matmul %215, %5, %cst_82 {dimension_numbers = #tpu.dot_dimension_numbers<[1], [0], [0], [1], [0, 0, 1, 1], [], []>} : vector<2x32xf32>, vector<32x32xf32>, vector<2x32xf32> -> vector<2x32xf32>
    %cst_83 = arith.constant dense<0.000000e+00> : vector<2x32xf32>
    %221 = tpu.matmul %215, %7, %cst_83 {dimension_numbers = #tpu.dot_dimension_numbers<[1], [0], [0], [1], [0, 0, 1, 1], [], []>} : vector<2x32xf32>, vector<32x32xf32>, vector<2x32xf32> -> vector<2x32xf32>
    %222 = arith.addf %221, %28 : vector<2x32xf32>
    %223 = arith.addf %13, %219 : vector<2x32xf32>
    %224 = arith.negf %223 : vector<2x32xf32>
    %225 = math.exp %224 : vector<2x32xf32>
    %cst_84 = arith.constant 1.000000e+00 : f32
    %226 = vector.broadcast %cst_84 : f32 to vector<2x32xf32>
    %227 = arith.addf %226, %225 : vector<2x32xf32>
    %228 = arith.divf %226, %227 : vector<2x32xf32>
    %229 = arith.addf %19, %220 : vector<2x32xf32>
    %230 = arith.negf %229 : vector<2x32xf32>
    %231 = math.exp %230 : vector<2x32xf32>
    %cst_85 = arith.constant 1.000000e+00 : f32
    %232 = vector.broadcast %cst_85 : f32 to vector<2x32xf32>
    %233 = arith.addf %232, %231 : vector<2x32xf32>
    %234 = arith.divf %232, %233 : vector<2x32xf32>
    %235 = arith.mulf %228, %222 : vector<2x32xf32>
    %236 = arith.addf %25, %235 : vector<2x32xf32>
    %237 = math.tanh %236 : vector<2x32xf32>
    %cst_86 = arith.constant 1.000000e+00 : f32
    %238 = vector.broadcast %cst_86 : f32 to vector<2x32xf32>
    %239 = arith.subf %238, %234 : vector<2x32xf32>
    %240 = arith.mulf %239, %237 : vector<2x32xf32>
    %241 = arith.mulf %234, %215 : vector<2x32xf32>
    %242 = arith.addf %240, %241 : vector<2x32xf32>
    %c0_87 = arith.constant 0 : index
    %c7 = arith.constant 7 : index
    %c0_88 = arith.constant 0 : index
    %243 = vector.load %arg8[%c0_87, %c7, %c0_88] : memref<2x8x32xf32, #tpu.memory_space<vmem>>, vector<2x1x32xf32>
    %244 = vector.shape_cast %243 : vector<2x1x32xf32> to vector<2x32xf32>
    %245 = vector.shape_cast %242 : vector<2x32xf32> to vector<2x1x32xf32>
    tpu.vector_store %arg8[%c0_87, %c7, %c0_88], %245 {strides = array<i32>} : memref<2x8x32xf32, #tpu.memory_space<vmem>>, vector<2x1x32xf32>,
    %c0_89 = arith.constant 0 : index
    %c0_90 = arith.constant 0 : index
    %c0_91 = arith.constant 0 : index
    %246 = vector.load %arg8[%c0_89, %c0_90, %c0_91] : memref<2x8x32xf32, #tpu.memory_space<vmem>>, vector<2x8x32xf32>
    %247 = vector.shape_cast %246 : vector<2x8x32xf32> to vector<16x32xf32>
    %c0_92 = arith.constant 0 : index
    %c0_93 = arith.constant 0 : index
    %248 = vector.load %arg5[%c0_92, %c0_93] : memref<32x128xf32, #tpu.memory_space<vmem>>, vector<32x128xf32>
    %cst_94 = arith.constant dense<0.000000e+00> : vector<16x128xf32>
    %249 = tpu.matmul %247, %248, %cst_94 {dimension_numbers = #tpu.dot_dimension_numbers<[1], [0], [0], [1], [0, 0, 1, 1], [], []>} : vector<16x32xf32>, vector<32x128xf32>, vector<16x128xf32> -> vector<16x128xf32>
    %c0_95 = arith.constant 0 : index
    %c0_96 = arith.constant 0 : index
    %250 = vector.load %arg6[%c0_95, %c0_96] : memref<1x128xf32, #tpu.memory_space<vmem>>, vector<1x128xf32>
    %251 = vector.broadcast %250 : vector<1x128xf32> to vector<16x128xf32>
    %252 = arith.addf %249, %251 : vector<16x128xf32>
    %253 = vector.shape_cast %252 : vector<16x128xf32> to vector<2x8x128xf32>
    %c0_97 = arith.constant 0 : index
    %c0_98 = arith.constant 0 : index
    %c0_99 = arith.constant 0 : index
    %254 = vector.load %arg7[%c0_97, %c0_98, %c0_99] : memref<2x8x128xf32, #tpu.memory_space<vmem>>, vector<2x8x128xf32>
    tpu.vector_store %arg7[%c0_97, %c0_98, %c0_99], %253 {strides = array<i32>} : memref<2x8x128xf32, #tpu.memory_space<vmem>>, vector<2x8x128xf32>,
    return
  }
  func.func @transform_0(%arg0: i32) -> (i32, i32) {
    %c0_i32 = arith.constant 0 : i32
    %c0_i32_0 = arith.constant 0 : i32
    return %arg0, %c0_i32 : i32, i32
  }
  func.func @transform_1(%arg0: i32) -> (i32, i32, i32) {
    %c0_i32 = arith.constant 0 : i32
    %c0_i32_0 = arith.constant 0 : i32
    %c0_i32_1 = arith.constant 0 : i32
    %c0_i32_2 = arith.constant 0 : i32
    return %c0_i32, %c0_i32_0, %c0_i32_1 : i32, i32, i32
  }
  func.func @transform_2(%arg0: i32) -> (i32, i32, i32) {
    %c0_i32 = arith.constant 0 : i32
    %c0_i32_0 = arith.constant 0 : i32
    %c0_i32_1 = arith.constant 0 : i32
    %c0_i32_2 = arith.constant 0 : i32
    return %c0_i32, %c0_i32_0, %c0_i32_1 : i32, i32, i32
  }
  func.func @transform_3(%arg0: i32) -> (i32, i32) {
    %c0_i32 = arith.constant 0 : i32
    %c0_i32_0 = arith.constant 0 : i32
    %c0_i32_1 = arith.constant 0 : i32
    return %c0_i32, %c0_i32_0 : i32, i32
  }
  func.func @transform_4(%arg0: i32) -> (i32, i32) {
    %c0_i32 = arith.constant 0 : i32
    %c0_i32_0 = arith.constant 0 : i32
    %c0_i32_1 = arith.constant 0 : i32
    return %c0_i32, %c0_i32_0 : i32, i32
  }
  func.func @transform_5(%arg0: i32) -> (i32, i32) {
    %c0_i32 = arith.constant 0 : i32
    %c0_i32_0 = arith.constant 0 : i32
    %c0_i32_1 = arith.constant 0 : i32
    return %c0_i32, %c0_i32_0 : i32, i32
  }
  func.func @transform_6(%arg0: i32) -> (i32, i32, i32) {
    %c0_i32 = arith.constant 0 : i32
    %c0_i32_0 = arith.constant 0 : i32
    %c0_i32_1 = arith.constant 0 : i32
    return %arg0, %c0_i32, %c0_i32_0 : i32, i32, i32
  }
}

</mosaic_0001>

<bundles_post_ra>
// kernel: tpu_custom_call.1
= control target key start
LH: loop header
LB: loop body
LE: loop exit
PB: predicated region body
PF: predicated region fallthrough
CT: control target
= control target key end

     0   :  { %11 = vsyncpa [#allocation4], 0  ;;  %s3808_s0 = inlined_call_operand.hbm [shape: f32[2,32], index: 0, kind: input, shape index: {}]   ;;  %s3809_s1 = inlined_call_operand.hbm [shape: f32[3,32,32], index: 1, kind: input, shape index: {}]   ;;  %s3810_s2 = inlined_call_operand.hbm [shape: f32[3,32,32], index: 2, kind: input, shape index: {}]   ;;  %s3811_s3 = inlined_call_operand.vmem [shape: f32[4,32], index: 3, kind: input, shape index: {}]   ;;  %s3812_s4 = inlined_call_operand.hbm [shape: f32[32,128], index: 4, kind: input, shape index: {}]   ;;  %s3813_s5 = inlined_call_operand.vmem [shape: f32[1,128], index: 5, kind: input, shape index: {}]   ;;  %s3814_s6 = inlined_call_operand.hbm [shape: f32[2,8,128], index: 6, kind: output, shape index: {}]  }
   0x1   :  { %12 = vsyncpa [#allocation7], 0 }
   0x2   :  { %13 = vsyncpa [#allocation10], 0 }
   0x3   :  { %14 = vsyncpa [#allocation5], 0  ;;  %s3405_s21 = smov [#allocation6]   ;;  %s3287_s25 = scalar_lea.hbm %s3809_s1, 1536 }
   0x4   :  { %s30_s22 = sshll.u32 %s3405_s21, 4  ;;  %p3288_p0 = scmp.ne.s32.totalorder %s3809_s1, %s3287_s25  ;;  %s31_s22 = int_to_ptr.vmem [resolvable:$true] %s30_s22 }
   0x5   :  { %p3291_p1 = scmp.lt.u32.totalorder %s3287_s25, %s3809_s1 }
   0x7   :  { %p3293_p2 = pnand %p3291_p1, %p3288_p0 }
   0x9   :  { %3296 = shalt.err (!%p3293_p2)
}
   0xa   :  { %s3297_s30 = scalar_lea.vmem %s31_s22, 1536  ;;  %p3302_p4 = scmp.lt.s32.totalorder %s31_s22, %s31_s22 }
   0xb   :  { %p3298_p3 = scmp.ne.s32.totalorder %s31_s22, %s3297_s30  ;;  %p3303_p5 = scmp.lt.s32.totalorder %s3297_s30, %s3297_s30 }
   0xd   :  { %p3304_p6 = por %p3303_p5, %p3302_p4 }
   0xf   :  { %p3305_p7 = pnand %p3304_p6, %p3298_p3 }
  0x11   :  { %3308 = shalt.err (!%p3305_p7)
}
  0x12   :  { %s3406_s7 = smov 128   ;;  %s3407_s8 = smov 8  }
  0x13   :  { %36 = dma.hbm_to_vmem [thread:$0]  %s3809_s1, 1536, %s31_s22, [#allocation7], %s3406_s7, %s3406_s7, %s3407_s8  }
  0x14   :  { %s3408_s11 = smov [#allocation3]   ;;  %s3409_s13 = smov [#allocation8]  }
  0x15   :  { %s21_s12 = sshll.u32 %s3408_s11, 4  ;;  %s42_s14 = sshll.u32 %s3409_s13, 4  ;;  %s22_s12 = int_to_ptr.vmem [resolvable:$true] %s21_s12  ;;  %s43_s14 = int_to_ptr.vmem [resolvable:$true] %s42_s14 }
  0x16   :  { %s3309_s17 = scalar_lea.hbm %s3808_s0, 32 }
  0x17   :  { %p3310_p8 = scmp.ne.s32.totalorder %s3808_s0, %s3309_s17  ;;  %p3313_p9 = scmp.lt.u32.totalorder %s3309_s17, %s3808_s0 }
  0x19   :  { %p3315_p10 = pnand %p3313_p9, %p3310_p8 }
  0x1b   :  { %3318 = shalt.err (!%p3315_p10)
}
  0x1c   :  { %s3319_s1 = scalar_lea.vmem %s22_s12, 32  ;;  %p3324_p12 = scmp.lt.s32.totalorder %s22_s12, %s22_s12 }
  0x1d   :  { %p3320_p11 = scmp.ne.s32.totalorder %s22_s12, %s3319_s1  ;;  %p3325_p13 = scmp.lt.s32.totalorder %s3319_s1, %s3319_s1 }
  0x1f   :  { %p3326_p0 = por %p3325_p13, %p3324_p12 }
  0x21   :  { %p3327_p1 = pnand %p3326_p0, %p3320_p11 }
  0x23   :  { %3330 = shalt.err (!%p3327_p1)
}
  0x24   :  { %24 = dma.hbm_to_vmem [thread:$0]  %s3808_s0, 32, %s22_s12, [#allocation4]  }
  0x25   :  { %s3331_s26 = scalar_lea.hbm %s3810_s2, 1536 }
  0x26   :  { %p3332_p2 = scmp.ne.s32.totalorder %s3810_s2, %s3331_s26  ;;  %p3335_p3 = scmp.lt.u32.totalorder %s3331_s26, %s3810_s2 }
  0x28   :  { %p3337_p4 = pnand %p3335_p3, %p3332_p2 }
  0x2a   :  { %3340 = shalt.err (!%p3337_p4)
}
  0x2b   :  { %s3341_s9 = scalar_lea.vmem %s43_s14, 1536  ;;  %p3346_p6 = scmp.lt.s32.totalorder %s43_s14, %s43_s14 }
  0x2c   :  { %p3342_p5 = scmp.ne.s32.totalorder %s43_s14, %s3341_s9  ;;  %p3347_p7 = scmp.lt.s32.totalorder %s3341_s9, %s3341_s9 }
  0x2e   :  { %p3348_p8 = por %p3347_p7, %p3346_p6 }
  0x30   :  { %p3349_p9 = pnand %p3348_p8, %p3342_p5 }
  0x32   :  { %3352 = shalt.err (!%p3349_p9)
}
  0x33   :  { %48 = dma.hbm_to_vmem [thread:$0]  %s3810_s2, 1536, %s43_s14, [#allocation7], %s3406_s7, %s3406_s7, %s3407_s8  }
  0x34   :  { %s3410_s11 = smov [#allocation9]   ;;  %s3353_s16 = scalar_lea.hbm %s3812_s4, 512 }
  0x35   :  { %s56_s12 = sshll.u32 %s3410_s11, 4  ;;  %p3354_p10 = scmp.ne.s32.totalorder %s3812_s4, %s3353_s16  ;;  %s57_s12 = int_to_ptr.vmem [resolvable:$true] %s56_s12 }
  0x36   :  { %p3357_p11 = scmp.lt.u32.totalorder %s3353_s16, %s3812_s4 }
  0x38   :  { %p3359_p12 = pnand %p3357_p11, %p3354_p10 }
  0x3a   :  { %3362 = shalt.err (!%p3359_p12)
}
  0x3b   :  { %s3363_s21 = scalar_lea.vmem %s57_s12, 512  ;;  %p3368_p0 = scmp.lt.s32.totalorder %s57_s12, %s57_s12 }
  0x3c   :  { %p3364_p13 = scmp.ne.s32.totalorder %s57_s12, %s3363_s21  ;;  %p3369_p1 = scmp.lt.s32.totalorder %s3363_s21, %s3363_s21 }
  0x3e   :  { %p3370_p2 = por %p3369_p1, %p3368_p0 }
  0x40   :  { %p3371_p3 = pnand %p3370_p2, %p3364_p13 }
  0x42   :  { %3374 = shalt.err (!%p3371_p3)
}
  0x43   :  { %62 = dma.hbm_to_vmem [thread:$0]  %s3812_s4, 512, %s57_s12, [#allocation10], %s3406_s7, %s3406_s7, %s3407_s8  }
  0x44   :  { %3397 = dma.done.wait [#allocation4], 32  }
  0x45   :  { %3398 = vsyncadd [#allocation4], 4294967264 }
  0x46   :  { %3399 = dma.done.wait [#allocation7], 3072  }
  0x47   :  { %3400 = vsyncadd [#allocation7], 4294964224 }
  0x48   :  { %3401 = dma.done.wait [#allocation10], 512  }
  0x49   :  { %3402 = vsyncadd [#allocation10], 4294966784  ;;  %v3411_v0 = vmov 0.0|0.0   ;;  %vm3412_vm0 = vmmov 0   ;;  %v3413_v1 = vmov 0.0   ;;  %v93_v2 = vld [vmem:[#allocation6] sm:$0xff]  ;;  %v97_v39 = vlaneseq }
  0x4a   :  { %3026 = vmatprep.subr.bf16.mxu0 %v3411_v0  ;;  %3032 = vmatprep.subr.bf16.mxu1 %v3411_v0  ;;  %v94_v3 = vld [vmem:[#allocation6 + $0x8] sm:$0xff]  ;;  %v176_v4 = vld [vmem:[#allocation6 + $0x20] sm:$0xff]  ;;  %v95_v7 = vld [vmem:[#allocation6 + $0x10] sm:$0xff]  ;;  %vm101_vm1 = vcmask 261120   ;;  %vm596_vm2 = vcmask 253952   ;;  %s3415_s23 = smov [#allocation11]  }
  0x4b   :  { %2737 = vmatprep.mubr.msk.f32.mxu1 %vm3412_vm0, %v3413_v1  ;;  %2726 = vmatprep.mubr.msk.f32.mxu0 %vm3412_vm0, %v3413_v1  ;;  %v3027_v5 = vpack.c.bf16 %v94_v3, %v93_v2  ;;  %v177_v6 = vld [vmem:[#allocation6 + $0x28] sm:$0xff]  ;;  %v96_v8 = vld [vmem:[#allocation6 + $0x18] sm:$0xff]  ;;  %v178_v10 = vld [vmem:[#allocation6 + $0x30] sm:$0xff]  ;;  %v98_v40 = vshrl.u32 %v97_v39, 7  ;;  %s2520_s24 = sshll.u32 %s3415_s23, 4  ;;  %s2521_s24 = int_to_ptr.vmem [resolvable:$true] %s2520_s24 }
  0x4c   :  { %v3033_v9 = vpack.c.bf16 %v177_v6, %v176_v4  ;;  %v179_v11 = vld [vmem:[#allocation6 + $0x38] sm:$0xff]  ;;  %v3030_v12 = vpack.c.bf16 %v96_v8, %v95_v7  ;;  %v255_v14 = vld [vmem:[#allocation6 + $0x40] sm:$0xff]  ;;  %v256_v15 = vld [vmem:[#allocation6 + $0x48] sm:$0xff]  ;;  %s3375_s25 = scalar_lea.vmem %s2521_s24, 256  ;;  %p3380_p5 = scmp.lt.s32.totalorder %s2521_s24, %s2521_s24 }
  0x4d   :  { %3028 = vmatpush3.bf16.msra.mxu0 %v3027_v5  ;;  %v3036_v13 = vpack.c.bf16 %v179_v11, %v178_v10  ;;  %v79_v16 = vld [vmem:[#allocation8] sm:$0xff]  ;;  %v80_v17 = vld [vmem:[#allocation8 + $0x8] sm:$0xff]  ;;  %v77_v18 = vld [vmem:[#allocation3] sm:$0x3]  ;;  %v3039_v19 = vpack.c.bf16 %v256_v15, %v255_v14  ;;  %v99_v41 = vsub.s32 0, %v98_v40  ;;  %v182_v49 = vsub.s32 1, %v98_v40  ;;  %p3376_p4 = scmp.ne.s32.totalorder %s2521_s24, %s3375_s25  ;;  %p3381_p6 = scmp.lt.s32.totalorder %s3375_s25, %s3375_s25 }
  0x4e   :  { %3034 = vmatpush3.bf16.msra.mxu1 %v3033_v9  ;;  %3029 = vmatprep.subr.bf16.mxu0 %v3411_v0  ;;  %v3517_v20 = vpack.c.bf16 %v80_v17, %v79_v16  ;;  %v257_v21 = vld [vmem:[#allocation6 + $0x50] sm:$0xff]  ;;  %v258_v22 = vld [vmem:[#allocation6 + $0x58] sm:$0xff]  ;;  %v84_v27 = vld [vmem:[#allocation8 + $0x20] sm:$0xff]  ;;  %v335_v4 = vsub.s32 3, %v98_v40  ;;  %v261_v6 = vsub.s32 2, %v98_v40 }
  0x4f   :  { %3035 = vmatprep.subr.bf16.mxu1 %v3411_v0  ;;  %v81_v23 = vld [vmem:[#allocation8 + $0x10] sm:$0xff]  ;;  %v82_v24 = vld [vmem:[#allocation8 + $0x18] sm:$0xff]  ;;  %v3042_v25 = vpack.c.bf16 %v258_v22, %v257_v21  ;;  %v85_v28 = vld [vmem:[#allocation8 + $0x28] sm:$0xff]  ;;  %v3414_v15 = vmov 1966171168   ;;  %p3382_p7 = por %p3381_p6, %p3380_p5 }
  0x50   :  { %v3524_v26 = vpack.c.bf16 %v82_v24, %v81_v23  ;;  %v89_v29 = vld [vmem:[#allocation8 + $0x40] sm:$0xff]  ;;  %v90_v30 = vld [vmem:[#allocation8 + $0x48] sm:$0xff]  ;;  %v3531_v31 = vpack.c.bf16 %v85_v28, %v84_v27  ;;  %v86_v32 = vld [vmem:[#allocation8 + $0x30] sm:$0xff]  ;;  %v573_v16 = vunpack.c.l.s4 %v3414_v15 }
  0x51   :  { %3031 = vmatpush3.bf16.msra.mxu0 %v3030_v12  ;;  %v87_v33 = vld [vmem:[#allocation8 + $0x38] sm:$0xff]  ;;  %v3536_v34 = vpack.c.bf16 %v90_v30, %v89_v29  ;;  %v91_v35 = vld [vmem:[#allocation8 + $0x50] sm:$0xff]  ;;  %v78_v43 = vld [vmem:[%s3811_s3] sm:$0xf]  ;;  %p3383_p8 = pnand %p3382_p7, %p3376_p4 }
  0x52   :  { %3037 = vmatpush3.bf16.msra.mxu1 %v3036_v13  ;;  %3038 = vmatprep.subr.bf16.mxu0 %v3411_v0  ;;  %v92_v36 = vld [vmem:[#allocation8 + $0x58] sm:$0xff]  ;;  %v3541_v37 = vpack.c.bf16 %v87_v33, %v86_v32  ;;  %v100_v47 = vrot.slane %v78_v43, %v99_v41  ;;  %v183_v55 = vrot.slane %v78_v43, %v182_v49 }
  0x53   :  { %3044 = vmatprep.subr.bf16.mxu1 %v3411_v0  ;;  %v3547_v38 = vpack.c.bf16 %v92_v36, %v91_v35  ;;  %v3579_v5 = vrot.slane %v78_v43, %v335_v4  ;;  %v262_v8 = vrot.slane %v78_v43, %v261_v6 }
  0x54   :  { %2727 = vmatmul.mubr.msk.f32.vlgmr.msra.gmra.mrb[0].mxu0 %vm101_vm1, %v77_v18 }
  0x55   :  { %2738 = vmatmul.mubr.msk.f32.vlgmr.msra.gmra.mrb[0].mxu1 %vm101_vm1, %v77_v18  ;;  %3040 = vmatpush3.bf16.msra.mxu0 %v3039_v19 }
  0x56   :  { %3046 = vmatpush3.bf16.msra.mxu1 %v3517_v20  ;;  %3041 = vmatprep.subr.bf16.mxu0 %v3411_v0 }
  0x57   :  { %3047 = vmatprep.subr.bf16.mxu1 %v3411_v0  ;;  %2759 = vmatprep.mubr.msk.f32.mxu1 %vm3412_vm0, %v3413_v1 }
  0x58   :  { %2748 = vmatprep.mubr.msk.f32.mxu0 %vm3412_vm0, %v3413_v1 }
  0x59   :  { %3043 = vmatpush3.bf16.msra.mxu0 %v3042_v25 }
  0x5a   :  { %3049 = vmatpush3.bf16.msra.mxu1 %v3524_v26  ;;  %3050 = vmatprep.subr.bf16.mxu0 %v3411_v0 }
  0x5b   :  { %3056 = vmatprep.subr.bf16.mxu1 %v3411_v0 }
  0x5c   :  { %2749 = vmatmul.mubr.msk.f32.vlgmr.msra.gmra.mrb[2].mxu0 %vm101_vm1, %v77_v18  ;;  %v574_v18 = vunpack.c.0.s8 %v573_v16 }
  0x5d   :  { %2760 = vmatmul.mubr.f32.vlgmr.msra.gmra.mrb[2].mxu1 %v3413_v1  ;;  %3052 = vmatpush3.bf16.msra.mxu0 %v3531_v31 }
  0x5e   :  { %3053 = vmatprep.subr.bf16.mxu0 %v3411_v0  ;;  %2770 = vmatprep.mubr.msk.f32.mxu0 %vm3412_vm0, %v3413_v1  ;;  %v3585_v22 = vsub.s32 %v574_v18, %v98_v40 }
  0x5f   :  { %3058 = vmatpush3.bf16.msra.mxu1 %v3536_v34  ;;  %2781 = vmatprep.mubr.msk.f32.mxu1 %vm3412_vm0, %v3413_v1 }
  0x60   :  { %3059 = vmatprep.subr.bf16.mxu1 %v3411_v0 }
  0x61   :  { %3055 = vmatpush3.bf16.msra.mxu0 %v3541_v37 }
  0x62   :  { %3062 = vmatprep.subr.bf16.mxu0 %v3411_v0 }
  0x63   :  { %3061 = vmatpush3.bf16.msra.mxu1 %v3547_v38 }
  0x64   :  { %2771 = vmatmul.mubr.f32.vlgmr.msra.gmra.mrb[4].mxu0 %v3413_v1  ;;  %3068 = vmatprep.subr.bf16.mxu1 %v3411_v0 }
  0x65   :  { %3064 = vmatpush3.bf16.msra.mxu0 %v3517_v20  ;;  %2792 = vmatprep.mubr.msk.f32.mxu0 %vm3412_vm0, %v3413_v1 }
  0x66   :  { %2782 = vmatmul.mubr.f32.vlgmr.msra.gmra.mrb[4].mxu1 %v3413_v1  ;;  %3065 = vmatprep.subr.bf16.mxu0 %v3411_v0 }
  0x67   :  { %3070 = vmatpush3.bf16.msra.mxu1 %v3531_v31  ;;  %2803 = vmatprep.mubr.msk.f32.mxu1 %vm3412_vm0, %v3413_v1 }
  0x68   :  { %3071 = vmatprep.subr.bf16.mxu1 %v3411_v0 }
  0x69   :  { %3067 = vmatpush3.bf16.msra.mxu0 %v3524_v26 }
  0x6a   :  { %3074 = vmatprep.subr.bf16.mxu0 %v3411_v0 }
  0x6b   :  { %3073 = vmatpush3.bf16.msra.mxu1 %v3541_v37 }
  0x6c   :  { %3080 = vmatprep.subr.bf16.mxu1 %v3411_v0 }
 0x127   :  { %v171_v42 = vpop.f32.mrb[0].mxu0 }
 0x128   :  { %v250_v44 = vpop.f32.mrb[0].mxu1  ;;  %v2728_v45 = vpop.f32.mrb[1].mxu0  ;;  %v3573_v48 = vadd.f32 %v171_v42, %v100_v47 }
 0x129   :  { %v2739_v46 = vpop.f32.mrb[1].mxu1  ;;  %v3576_v57 = vadd.f32 %v250_v44, %v183_v55 }
 0x12f   :  { %v329_v50 = vpop.f32.mrb[2].mxu0 }
 0x130   :  { %v406_v51 = vpop.f32.mrb[2].mxu1  ;;  %v2750_v52 = vpop.f32.mrb[3].mxu0  ;;  %v3582_v12 = vadd.f32 %v329_v50, %v262_v8 }
 0x131   :  { %v550_v53 = vadd.f32 %v406_v51, %v3573_v48  ;;  %v2761_v54 = vpop.f32.mrb[3].mxu1 }
 0x133   :  { %v2537_v56 = vmul.f32 -1.442695, %v550_v53 }
 0x135   :  { %3207 = vpow2.f32 %v2537_v56 }
 0x137   :  { %v476_v58 = vpop.f32.mrb[4].mxu0 }
 0x138   :  { %v557_v59 = vadd.f32 %v476_v58, %v3576_v57  ;;  %v2772_v60 = vpop.f32.mrb[5].mxu0 }
 0x139   :  { %v546_v61 = vpop.f32.mrb[4].mxu1 }
 0x13a   :  { %v2538_v62 = vmul.f32 -1.442695, %v557_v59  ;;  %v2783_v63 = vpop.f32.mrb[5].mxu1  ;;  %v547_v10 = vadd.f32 %v546_v61, %v3579_v5 }
 0x13c   :  { %3209 = vpow2.f32 %v2538_v62 }
 0x13f   :  { %v3208_v2 = vpop.eup %3207 }
 0x140   :  { %v554_v3 = vadd.f32 1.0, %v3208_v2 }
 0x142   :  { %3211 = vrcp.f32 %v554_v3 }
 0x146   :  { %v3210_v7 = vpop.eup %3209 }
 0x147   :  { %v561_v9 = vadd.f32 1.0, %v3210_v7 }
 0x149   :  { %3213 = vrcp.f32 %v561_v9 }
 0x14c   :  { %v3212_v11 = vpop.eup %3211 }
 0x14d   :  { %v564_v13 = vmul.f32 %v3212_v11, %v547_v10 }
 0x14f   :  { %v565_v14 = vadd.f32 %v564_v13, %v3582_v12 }
 0x151   :  { %3215 = vtanh.f32 %v565_v14 }
 0x153   :  { %v3214_v17 = vpop.eup %3213 }
 0x154   :  { %v567_v19 = vsub.f32 1.0, %v3214_v17  ;;  %v569_v24 = vmul.f32 0.0, %v3214_v17 }
 0x15b   :  { %v3216_v21 = vpop.eup %3215 }
 0x15c   :  { %v568_v23 = vmul.f32 %v3216_v21, %v567_v19 }
 0x15e   :  { %v570_v25 = vadd.f32 %v569_v24, %v568_v23 }
 0x160   :  { %v578_v27 = vrot.slane %v570_v25, %v3585_v22  ;;  %2793 = vmatmul.mubr.msk.f32.vlgmr.msra.gmra.mrb[6].mxu0 %vm101_vm1, %v570_v25  ;;  %2804 = vmatmul.mubr.msk.f32.vlgmr.msra.gmra.mrb[6].mxu1 %vm101_vm1, %v570_v25 }
 0x161   :  { %3076 = vmatpush3.bf16.msra.mxu0 %v3536_v34  ;;  %2814 = vmatprep.mubr.msk.f32.mxu0 %vm3412_vm0, %v3413_v1 }
 0x162   :  { %v579_v28 = vcombine.high %v578_v27, %v578_v27  ;;  %v586_v29 = vrot.slane %v578_v27, %v3585_v22  ;;  %3077 = vmatprep.subr.bf16.mxu0 %v3411_v0  ;;  %3082 = vmatpush3.bf16.msra.mxu1 %v3517_v20 }
 0x163   :  { %3083 = vmatprep.subr.bf16.mxu1 %v3411_v0  ;;  %2825 = vmatprep.mubr.msk.f32.mxu1 %vm3412_vm0, %v3413_v1 }
 0x164   :  { %v593_v30 = vrot.slane %v579_v28, %v3585_v22  ;;  %597 = vst.msk [vmem:[#allocation2] sm:$0x1] %vm596_vm2, %v586_v29 }
 0x165   :  { %3079 = vmatpush3.bf16.msra.mxu0 %v3547_v38 }
 0x166   :  { %598 = vst.msk [vmem:[#allocation2 + $0x8] sm:$0x1] %vm596_vm2, %v593_v30  ;;  %3086 = vmatprep.subr.bf16.mxu0 %v3411_v0  ;;  %3085 = vmatpush3.bf16.msra.mxu1 %v3524_v26 }
 0x167   :  { %3092 = vmatprep.subr.bf16.mxu1 %v3411_v0 }
 0x168   :  { %2815 = vmatmul.mubr.msk.f32.vlgmr.msra.gmra.mrb[8].mxu0 %vm101_vm1, %v570_v25 }
 0x169   :  { %3088 = vmatpush3.bf16.msra.mxu0 %v3531_v31  ;;  %2836 = vmatprep.mubr.msk.f32.mxu0 %vm3412_vm0, %v3413_v1 }
 0x16a   :  { %3089 = vmatprep.subr.bf16.mxu0 %v3411_v0 }
 0x16d   :  { %3091 = vmatpush3.bf16.msra.mxu0 %v3541_v37 }
 0x16e   :  { %3098 = vmatprep.subr.bf16.mxu0 %v3411_v0 }
 0x233   :  { %v667_v32 = vpop.f32.mrb[6].mxu0  ;;  %v737_v33 = vpop.f32.mrb[6].mxu1 }
 0x234   :  { %v811_v35 = vadd.f32 %v667_v32, %v3573_v48  ;;  %v2794_v36 = vpop.f32.mrb[7].mxu0  ;;  %v2805_v39 = vpop.f32.mrb[7].mxu1  ;;  %v818_v41 = vadd.f32 %v737_v33, %v3576_v57 }
 0x236   :  { %v2542_v40 = vmul.f32 -1.442695, %v811_v35  ;;  %v2543_v42 = vmul.f32 -1.442695, %v818_v41 }
 0x238   :  { %3217 = vpow2.f32 %v2542_v40 }
 0x239   :  { %3219 = vpow2.f32 %v2543_v42 }
 0x23b   :  { %v807_v43 = vpop.f32.mrb[8].mxu0 }
 0x23c   :  { %v2816_v44 = vpop.f32.mrb[9].mxu0  ;;  %v808_v50 = vadd.f32 %v807_v43, %v3579_v5 }
 0x242   :  { %v3218_v45 = vpop.eup %3217 }
 0x243   :  { %v815_v46 = vadd.f32 1.0, %v3218_v45  ;;  %v3220_v47 = vpop.eup %3219 }
 0x244   :  { %v822_v49 = vadd.f32 1.0, %v3220_v47 }
 0x245   :  { %3221 = vrcp.f32 %v815_v46 }
 0x246   :  { %3223 = vrcp.f32 %v822_v49 }
 0x24f   :  { %v3222_v51 = vpop.eup %3221 }
 0x250   :  { %v825_v52 = vmul.f32 %v3222_v51, %v808_v50  ;;  %v3224_v54 = vpop.eup %3223 }
 0x251   :  { %v828_v55 = vsub.f32 1.0, %v3224_v54  ;;  %v830_v59 = vmul.f32 %v3224_v54, %v570_v25 }
 0x252   :  { %v826_v53 = vadd.f32 %v825_v52, %v3582_v12 }
 0x254   :  { %3225 = vtanh.f32 %v826_v53 }
 0x25e   :  { %v3226_v56 = vpop.eup %3225 }
 0x25f   :  { %v829_v58 = vmul.f32 %v3226_v56, %v828_v55 }
 0x261   :  { %v831_v60 = vadd.f32 %v830_v59, %v829_v58 }
 0x263   :  { %v839_v61 = vrot.slane %v831_v60, %v3585_v22  ;;  %2826 = vmatmul.mubr.msk.f32.vlgmr.msra.gmra.mrb[8].mxu1 %vm101_vm1, %v831_v60  ;;  %2837 = vmatmul.mubr.msk.f32.vlgmr.msra.gmra.mrb[10].mxu0 %vm101_vm1, %v831_v60 }
 0x264   :  { %3094 = vmatpush3.bf16.msra.mxu1 %v3536_v34  ;;  %2847 = vmatprep.mubr.msk.f32.mxu1 %vm3412_vm0, %v3413_v1 }
 0x265   :  { %v840_v62 = vcombine.high %v839_v61, %v839_v61  ;;  %v847_v63 = vrot.slane %v839_v61, %v3585_v22  ;;  %3095 = vmatprep.subr.bf16.mxu1 %v3411_v0  ;;  %3100 = vmatpush3.bf16.msra.mxu0 %v3517_v20 }
 0x266   :  { %3101 = vmatprep.subr.bf16.mxu0 %v3411_v0  ;;  %2858 = vmatprep.mubr.msk.f32.mxu0 %vm3412_vm0, %v3413_v1 }
 0x267   :  { %v854_v2 = vrot.slane %v840_v62, %v3585_v22  ;;  %857 = vst.msk [vmem:[#allocation2 + $0x1] sm:$0x1] %vm596_vm2, %v847_v63 }
 0x268   :  { %3097 = vmatpush3.bf16.msra.mxu1 %v3547_v38 }
 0x269   :  { %858 = vst.msk [vmem:[#allocation2 + $0x9] sm:$0x1] %vm596_vm2, %v854_v2  ;;  %3104 = vmatprep.subr.bf16.mxu1 %v3411_v0  ;;  %3103 = vmatpush3.bf16.msra.mxu0 %v3524_v26 }
 0x26a   :  { %3110 = vmatprep.subr.bf16.mxu0 %v3411_v0 }
 0x26b   :  { %2848 = vmatmul.mubr.msk.f32.vlgmr.msra.gmra.mrb[10].mxu1 %vm101_vm1, %v831_v60 }
 0x26c   :  { %3106 = vmatpush3.bf16.msra.mxu1 %v3531_v31  ;;  %2869 = vmatprep.mubr.msk.f32.mxu1 %vm3412_vm0, %v3413_v1 }
 0x26d   :  { %3107 = vmatprep.subr.bf16.mxu1 %v3411_v0 }
 0x270   :  { %3109 = vmatpush3.bf16.msra.mxu1 %v3541_v37 }
 0x271   :  { %3116 = vmatprep.subr.bf16.mxu1 %v3411_v0 }
 0x336   :  { %v927_v3 = vpop.f32.mrb[8].mxu1  ;;  %v997_v4 = vpop.f32.mrb[10].mxu0 }
 0x337   :  { %v1071_v6 = vadd.f32 %v927_v3, %v3573_v48  ;;  %v2827_v7 = vpop.f32.mrb[9].mxu1  ;;  %v2838_v8 = vpop.f32.mrb[11].mxu0  ;;  %v1078_v10 = vadd.f32 %v997_v4, %v3576_v57 }
 0x339   :  { %v2547_v9 = vmul.f32 -1.442695, %v1071_v6  ;;  %v2548_v11 = vmul.f32 -1.442695, %v1078_v10 }
 0x33b   :  { %3227 = vpow2.f32 %v2547_v9 }
 0x33c   :  { %3229 = vpow2.f32 %v2548_v11 }
 0x33e   :  { %v1067_v13 = vpop.f32.mrb[10].mxu1 }
 0x33f   :  { %v2849_v14 = vpop.f32.mrb[11].mxu1  ;;  %v1068_v19 = vadd.f32 %v1067_v13, %v3579_v5 }
 0x345   :  { %v3228_v15 = vpop.eup %3227 }
 0x346   :  { %v1075_v16 = vadd.f32 1.0, %v3228_v15  ;;  %v3230_v17 = vpop.eup %3229 }
 0x347   :  { %v1082_v18 = vadd.f32 1.0, %v3230_v17 }
 0x348   :  { %3231 = vrcp.f32 %v1075_v16 }
 0x349   :  { %3233 = vrcp.f32 %v1082_v18 }
 0x352   :  { %v3232_v21 = vpop.eup %3231 }
 0x353   :  { %v1085_v23 = vmul.f32 %v3232_v21, %v1068_v19  ;;  %v3234_v25 = vpop.eup %3233 }
 0x354   :  { %v1088_v27 = vsub.f32 1.0, %v3234_v25  ;;  %v1090_v30 = vmul.f32 %v3234_v25, %v831_v60 }
 0x355   :  { %v1086_v24 = vadd.f32 %v1085_v23, %v3582_v12 }
 0x357   :  { %3235 = vtanh.f32 %v1086_v24 }
 0x361   :  { %v3236_v28 = vpop.eup %3235 }
 0x362   :  { %v1089_v29 = vmul.f32 %v3236_v28, %v1088_v27 }
 0x364   :  { %v1091_v32 = vadd.f32 %v1090_v30, %v1089_v29 }
 0x366   :  { %v1099_v33 = vrot.slane %v1091_v32, %v3585_v22  ;;  %2859 = vmatmul.mubr.msk.f32.vlgmr.msra.gmra.mrb[12].mxu0 %vm101_vm1, %v1091_v32  ;;  %2870 = vmatmul.mubr.msk.f32.vlgmr.msra.gmra.mrb[12].mxu1 %vm101_vm1, %v1091_v32 }
 0x367   :  { %3112 = vmatpush3.bf16.msra.mxu0 %v3536_v34  ;;  %2880 = vmatprep.mubr.msk.f32.mxu0 %vm3412_vm0, %v3413_v1 }
 0x368   :  { %v1100_v35 = vcombine.high %v1099_v33, %v1099_v33  ;;  %v1107_v36 = vrot.slane %v1099_v33, %v3585_v22  ;;  %3113 = vmatprep.subr.bf16.mxu0 %v3411_v0  ;;  %3118 = vmatpush3.bf16.msra.mxu1 %v3517_v20 }
 0x369   :  { %3119 = vmatprep.subr.bf16.mxu1 %v3411_v0  ;;  %2891 = vmatprep.mubr.msk.f32.mxu1 %vm3412_vm0, %v3413_v1 }
 0x36a   :  { %v1114_v39 = vrot.slane %v1100_v35, %v3585_v22  ;;  %1117 = vst.msk [vmem:[#allocation2 + $0x2] sm:$0x1] %vm596_vm2, %v1107_v36 }
 0x36b   :  { %3115 = vmatpush3.bf16.msra.mxu0 %v3547_v38 }
 0x36c   :  { %1118 = vst.msk [vmem:[#allocation2 + $0xa] sm:$0x1] %vm596_vm2, %v1114_v39  ;;  %3122 = vmatprep.subr.bf16.mxu0 %v3411_v0  ;;  %3121 = vmatpush3.bf16.msra.mxu1 %v3524_v26 }
 0x36d   :  { %3128 = vmatprep.subr.bf16.mxu1 %v3411_v0 }
 0x36e   :  { %2881 = vmatmul.mubr.msk.f32.vlgmr.msra.gmra.mrb[14].mxu0 %vm101_vm1, %v1091_v32 }
 0x36f   :  { %3124 = vmatpush3.bf16.msra.mxu0 %v3531_v31  ;;  %2902 = vmatprep.mubr.msk.f32.mxu0 %vm3412_vm0, %v3413_v1 }
 0x370   :  { %3125 = vmatprep.subr.bf16.mxu0 %v3411_v0 }
 0x373   :  { %3127 = vmatpush3.bf16.msra.mxu0 %v3541_v37 }
 0x374   :  { %3134 = vmatprep.subr.bf16.mxu0 %v3411_v0 }
 0x439   :  { %v1187_v40 = vpop.f32.mrb[12].mxu0  ;;  %v1257_v41 = vpop.f32.mrb[12].mxu1 }
 0x43a   :  { %v1331_v42 = vadd.f32 %v1187_v40, %v3573_v48  ;;  %v2860_v43 = vpop.f32.mrb[13].mxu0  ;;  %v2871_v44 = vpop.f32.mrb[13].mxu1  ;;  %v1338_v46 = vadd.f32 %v1257_v41, %v3576_v57 }
 0x43c   :  { %v2552_v45 = vmul.f32 -1.442695, %v1331_v42  ;;  %v2553_v47 = vmul.f32 -1.442695, %v1338_v46 }
 0x43e   :  { %3237 = vpow2.f32 %v2552_v45 }
 0x43f   :  { %3239 = vpow2.f32 %v2553_v47 }
 0x441   :  { %v1327_v49 = vpop.f32.mrb[14].mxu0 }
 0x442   :  { %v2882_v50 = vpop.f32.mrb[15].mxu0  ;;  %v1328_v55 = vadd.f32 %v1327_v49, %v3579_v5 }
 0x448   :  { %v3238_v51 = vpop.eup %3237 }
 0x449   :  { %v1335_v52 = vadd.f32 1.0, %v3238_v51  ;;  %v3240_v53 = vpop.eup %3239 }
 0x44a   :  { %v1342_v54 = vadd.f32 1.0, %v3240_v53 }
 0x44b   :  { %3241 = vrcp.f32 %v1335_v52 }
 0x44c   :  { %3243 = vrcp.f32 %v1342_v54 }
 0x455   :  { %v3242_v56 = vpop.eup %3241 }
 0x456   :  { %v1345_v58 = vmul.f32 %v3242_v56, %v1328_v55  ;;  %v3244_v60 = vpop.eup %3243 }
 0x457   :  { %v1348_v61 = vsub.f32 1.0, %v3244_v60  ;;  %v1350_v2 = vmul.f32 %v3244_v60, %v1091_v32 }
 0x458   :  { %v1346_v59 = vadd.f32 %v1345_v58, %v3582_v12 }
 0x45a   :  { %3245 = vtanh.f32 %v1346_v59 }
 0x464   :  { %v3246_v62 = vpop.eup %3245 }
 0x465   :  { %v1349_v63 = vmul.f32 %v3246_v62, %v1348_v61 }
 0x467   :  { %v1351_v3 = vadd.f32 %v1350_v2, %v1349_v63 }
 0x469   :  { %v1359_v4 = vrot.slane %v1351_v3, %v3585_v22  ;;  %2892 = vmatmul.mubr.msk.f32.vlgmr.msra.gmra.mrb[14].mxu1 %vm101_vm1, %v1351_v3  ;;  %2903 = vmatmul.mubr.msk.f32.vlgmr.msra.gmra.mrb[16].mxu0 %vm101_vm1, %v1351_v3 }
 0x46a   :  { %3130 = vmatpush3.bf16.msra.mxu1 %v3536_v34  ;;  %2913 = vmatprep.mubr.msk.f32.mxu1 %vm3412_vm0, %v3413_v1 }
 0x46b   :  { %v1360_v6 = vcombine.high %v1359_v4, %v1359_v4  ;;  %v1367_v7 = vrot.slane %v1359_v4, %v3585_v22  ;;  %3131 = vmatprep.subr.bf16.mxu1 %v3411_v0  ;;  %3136 = vmatpush3.bf16.msra.mxu0 %v3517_v20 }
 0x46c   :  { %3137 = vmatprep.subr.bf16.mxu0 %v3411_v0  ;;  %2924 = vmatprep.mubr.msk.f32.mxu0 %vm3412_vm0, %v3413_v1 }
 0x46d   :  { %v1374_v8 = vrot.slane %v1360_v6, %v3585_v22  ;;  %1377 = vst.msk [vmem:[#allocation2 + $0x3] sm:$0x1] %vm596_vm2, %v1367_v7 }
 0x46e   :  { %3133 = vmatpush3.bf16.msra.mxu1 %v3547_v38 }
 0x46f   :  { %1378 = vst.msk [vmem:[#allocation2 + $0xb] sm:$0x1] %vm596_vm2, %v1374_v8  ;;  %3140 = vmatprep.subr.bf16.mxu1 %v3411_v0  ;;  %3139 = vmatpush3.bf16.msra.mxu0 %v3524_v26 }
 0x470   :  { %3146 = vmatprep.subr.bf16.mxu0 %v3411_v0 }
 0x471   :  { %2914 = vmatmul.mubr.msk.f32.vlgmr.msra.gmra.mrb[16].mxu1 %vm101_vm1, %v1351_v3 }
 0x472   :  { %3142 = vmatpush3.bf16.msra.mxu1 %v3531_v31  ;;  %2935 = vmatprep.mubr.msk.f32.mxu1 %vm3412_vm0, %v3413_v1 }
 0x473   :  { %3143 = vmatprep.subr.bf16.mxu1 %v3411_v0 }
 0x476   :  { %3145 = vmatpush3.bf16.msra.mxu1 %v3541_v37 }
 0x477   :  { %3152 = vmatprep.subr.bf16.mxu1 %v3411_v0 }
 0x53c   :  { %v1447_v9 = vpop.f32.mrb[14].mxu1  ;;  %v1517_v10 = vpop.f32.mrb[16].mxu0 }
 0x53d   :  { %v1591_v11 = vadd.f32 %v1447_v9, %v3573_v48  ;;  %v2893_v13 = vpop.f32.mrb[15].mxu1  ;;  %v2904_v14 = vpop.f32.mrb[17].mxu0  ;;  %v1598_v16 = vadd.f32 %v1517_v10, %v3576_v57 }
 0x53f   :  { %v2557_v15 = vmul.f32 -1.442695, %v1591_v11  ;;  %v2558_v17 = vmul.f32 -1.442695, %v1598_v16 }
 0x541   :  { %3247 = vpow2.f32 %v2557_v15 }
 0x542   :  { %3249 = vpow2.f32 %v2558_v17 }
 0x544   :  { %v1587_v18 = vpop.f32.mrb[16].mxu1 }
 0x545   :  { %v2915_v19 = vpop.f32.mrb[17].mxu1  ;;  %v1588_v27 = vadd.f32 %v1587_v18, %v3579_v5 }
 0x54b   :  { %v3248_v21 = vpop.eup %3247 }
 0x54c   :  { %v1595_v23 = vadd.f32 1.0, %v3248_v21  ;;  %v3250_v24 = vpop.eup %3249 }
 0x54d   :  { %v1602_v25 = vadd.f32 1.0, %v3250_v24 }
 0x54e   :  { %3251 = vrcp.f32 %v1595_v23 }
 0x54f   :  { %3253 = vrcp.f32 %v1602_v25 }
 0x558   :  { %v3252_v28 = vpop.eup %3251 }
 0x559   :  { %v1605_v29 = vmul.f32 %v3252_v28, %v1588_v27  ;;  %v3254_v32 = vpop.eup %3253 }
 0x55a   :  { %v1608_v33 = vsub.f32 1.0, %v3254_v32  ;;  %v1610_v39 = vmul.f32 %v3254_v32, %v1351_v3 }
 0x55b   :  { %v1606_v30 = vadd.f32 %v1605_v29, %v3582_v12 }
 0x55d   :  { %3255 = vtanh.f32 %v1606_v30 }
 0x567   :  { %v3256_v35 = vpop.eup %3255 }
 0x568   :  { %v1609_v36 = vmul.f32 %v3256_v35, %v1608_v33 }
 0x56a   :  { %v1611_v40 = vadd.f32 %v1610_v39, %v1609_v36 }
 0x56c   :  { %v1619_v41 = vrot.slane %v1611_v40, %v3585_v22  ;;  %2925 = vmatmul.mubr.msk.f32.vlgmr.msra.gmra.mrb[18].mxu0 %vm101_vm1, %v1611_v40  ;;  %2936 = vmatmul.mubr.msk.f32.vlgmr.msra.gmra.mrb[18].mxu1 %vm101_vm1, %v1611_v40 }
 0x56d   :  { %3148 = vmatpush3.bf16.msra.mxu0 %v3536_v34  ;;  %2946 = vmatprep.mubr.msk.f32.mxu0 %vm3412_vm0, %v3413_v1 }
 0x56e   :  { %v1620_v42 = vcombine.high %v1619_v41, %v1619_v41  ;;  %v1627_v43 = vrot.slane %v1619_v41, %v3585_v22  ;;  %3149 = vmatprep.subr.bf16.mxu0 %v3411_v0  ;;  %3154 = vmatpush3.bf16.msra.mxu1 %v3517_v20 }
 0x56f   :  { %3155 = vmatprep.subr.bf16.mxu1 %v3411_v0  ;;  %2957 = vmatprep.mubr.msk.f32.mxu1 %vm3412_vm0, %v3413_v1 }
 0x570   :  { %v1634_v44 = vrot.slane %v1620_v42, %v3585_v22  ;;  %1637 = vst.msk [vmem:[#allocation2 + $0x4] sm:$0x1] %vm596_vm2, %v1627_v43 }
 0x571   :  { %3151 = vmatpush3.bf16.msra.mxu0 %v3547_v38 }
 0x572   :  { %1638 = vst.msk [vmem:[#allocation2 + $0xc] sm:$0x1] %vm596_vm2, %v1634_v44  ;;  %3158 = vmatprep.subr.bf16.mxu0 %v3411_v0  ;;  %3157 = vmatpush3.bf16.msra.mxu1 %v3524_v26 }
 0x573   :  { %3164 = vmatprep.subr.bf16.mxu1 %v3411_v0 }
 0x574   :  { %2947 = vmatmul.mubr.msk.f32.vlgmr.msra.gmra.mrb[20].mxu0 %vm101_vm1, %v1611_v40 }
 0x575   :  { %3160 = vmatpush3.bf16.msra.mxu0 %v3531_v31  ;;  %2968 = vmatprep.mubr.msk.f32.mxu0 %vm3412_vm0, %v3413_v1 }
 0x576   :  { %3161 = vmatprep.subr.bf16.mxu0 %v3411_v0 }
 0x579   :  { %3163 = vmatpush3.bf16.msra.mxu0 %v3541_v37 }
 0x57a   :  { %3170 = vmatprep.subr.bf16.mxu0 %v3411_v0 }
 0x63f   :  { %v1707_v45 = vpop.f32.mrb[18].mxu0  ;;  %v1777_v46 = vpop.f32.mrb[18].mxu1 }
 0x640   :  { %v1851_v47 = vadd.f32 %v1707_v45, %v3573_v48  ;;  %v2926_v49 = vpop.f32.mrb[19].mxu0  ;;  %v2937_v50 = vpop.f32.mrb[19].mxu1  ;;  %v1858_v52 = vadd.f32 %v1777_v46, %v3576_v57  ;;  %v2421_v46 = vld [vmem:[#allocation9] sm:$0xff] }
 0x641   :  { %v2423_v49 = vld [vmem:[#allocation9 + $0x10] sm:$0xff] }
 0x642   :  { %v2562_v51 = vmul.f32 -1.442695, %v1851_v47  ;;  %v2563_v53 = vmul.f32 -1.442695, %v1858_v52 }
 0x644   :  { %3257 = vpow2.f32 %v2562_v51 }
 0x645   :  { %3259 = vpow2.f32 %v2563_v53 }
 0x647   :  { %v1847_v54 = vpop.f32.mrb[20].mxu0 }
 0x648   :  { %v2948_v55 = vpop.f32.mrb[21].mxu0  ;;  %v1848_v61 = vadd.f32 %v1847_v54, %v3579_v5 }
 0x64e   :  { %v3258_v56 = vpop.eup %3257 }
 0x64f   :  { %v1855_v58 = vadd.f32 1.0, %v3258_v56  ;;  %v3260_v59 = vpop.eup %3259 }
 0x650   :  { %v1862_v60 = vadd.f32 1.0, %v3260_v59 }
 0x651   :  { %3261 = vrcp.f32 %v1855_v58 }
 0x652   :  { %3263 = vrcp.f32 %v1862_v60 }
 0x65b   :  { %v3262_v62 = vpop.eup %3261 }
 0x65c   :  { %v1865_v63 = vmul.f32 %v3262_v62, %v1848_v61  ;;  %v3264_v3 = vpop.eup %3263 }
 0x65d   :  { %v1868_v4 = vsub.f32 1.0, %v3264_v3  ;;  %v1870_v8 = vmul.f32 %v3264_v3, %v1611_v40 }
 0x65e   :  { %v1866_v2 = vadd.f32 %v1865_v63, %v3582_v12 }
 0x660   :  { %3265 = vtanh.f32 %v1866_v2 }
 0x66a   :  { %v3266_v6 = vpop.eup %3265 }
 0x66b   :  { %v1869_v7 = vmul.f32 %v3266_v6, %v1868_v4 }
 0x66d   :  { %v1871_v9 = vadd.f32 %v1870_v8, %v1869_v7 }
 0x66f   :  { %v1879_v10 = vrot.slane %v1871_v9, %v3585_v22  ;;  %2958 = vmatmul.mubr.msk.f32.vlgmr.msra.gmra.mrb[20].mxu1 %vm101_vm1, %v1871_v9  ;;  %2969 = vmatmul.mubr.msk.f32.vlgmr.msra.gmra.mrb[22].mxu0 %vm101_vm1, %v1871_v9 }
 0x670   :  { %3166 = vmatpush3.bf16.msra.mxu1 %v3536_v34  ;;  %2979 = vmatprep.mubr.msk.f32.mxu1 %vm3412_vm0, %v3413_v1 }
 0x671   :  { %v1880_v11 = vcombine.high %v1879_v10, %v1879_v10  ;;  %v1887_v13 = vrot.slane %v1879_v10, %v3585_v22  ;;  %3167 = vmatprep.subr.bf16.mxu1 %v3411_v0  ;;  %3172 = vmatpush3.bf16.msra.mxu0 %v3517_v20 }
 0x672   :  { %3173 = vmatprep.subr.bf16.mxu0 %v3411_v0  ;;  %2990 = vmatprep.mubr.msk.f32.mxu0 %vm3412_vm0, %v3413_v1 }
 0x673   :  { %v1894_v14 = vrot.slane %v1880_v11, %v3585_v22  ;;  %1897 = vst.msk [vmem:[#allocation2 + $0x5] sm:$0x1] %vm596_vm2, %v1887_v13 }
 0x674   :  { %3169 = vmatpush3.bf16.msra.mxu1 %v3547_v38 }
 0x675   :  { %1898 = vst.msk [vmem:[#allocation2 + $0xd] sm:$0x1] %vm596_vm2, %v1894_v14  ;;  %3176 = vmatprep.subr.bf16.mxu1 %v3411_v0  ;;  %3175 = vmatpush3.bf16.msra.mxu0 %v3524_v26 }
 0x676   :  { %3182 = vmatprep.subr.bf16.mxu0 %v3411_v0 }
 0x677   :  { %2980 = vmatmul.mubr.msk.f32.vlgmr.msra.gmra.mrb[22].mxu1 %vm101_vm1, %v1871_v9 }
 0x678   :  { %3178 = vmatpush3.bf16.msra.mxu1 %v3531_v31  ;;  %3001 = vmatprep.mubr.msk.f32.mxu1 %vm3412_vm0, %v3413_v1 }
 0x679   :  { %3179 = vmatprep.subr.bf16.mxu1 %v3411_v0 }
 0x67c   :  { %3181 = vmatpush3.bf16.msra.mxu1 %v3541_v37 }
 0x742   :  { %v1967_v20 = vpop.f32.mrb[20].mxu1  ;;  %v2037_v15 = vpop.f32.mrb[22].mxu0 }
 0x743   :  { %v2111_v16 = vadd.f32 %v1967_v20, %v3573_v48  ;;  %v2959_v17 = vpop.f32.mrb[21].mxu1  ;;  %v2970_v18 = vpop.f32.mrb[23].mxu0  ;;  %v2118_v19 = vadd.f32 %v2037_v15, %v3576_v57  ;;  %v2574_v15 = vld [vmem:[%s3813_s5] ss:$0 sm:$0xff] }
 0x745   :  { %v2567_v26 = vmul.f32 -1.442695, %v2111_v16  ;;  %v2568_v21 = vmul.f32 -1.442695, %v2118_v19 }
 0x747   :  { %3267 = vpow2.f32 %v2567_v26 }
 0x748   :  { %3269 = vpow2.f32 %v2568_v21 }
 0x74a   :  { %v2107_v23 = vpop.f32.mrb[22].mxu1 }
 0x74b   :  { %v2981_v31 = vpop.f32.mrb[23].mxu1  ;;  %v2108_v37 = vadd.f32 %v2107_v23, %v3579_v5 }
 0x751   :  { %v3268_v24 = vpop.eup %3267 }
 0x752   :  { %v2115_v25 = vadd.f32 1.0, %v3268_v24  ;;  %v3270_v27 = vpop.eup %3269 }
 0x753   :  { %v2122_v28 = vadd.f32 1.0, %v3270_v27 }
 0x754   :  { %3271 = vrcp.f32 %v2115_v25 }
 0x755   :  { %3273 = vrcp.f32 %v2122_v28 }
 0x75e   :  { %v3272_v29 = vpop.eup %3271 }
 0x75f   :  { %v2125_v30 = vmul.f32 %v3272_v29, %v2108_v37  ;;  %v3274_v33 = vpop.eup %3273 }
 0x760   :  { %v2128_v35 = vsub.f32 1.0, %v3274_v33  ;;  %v2130_v40 = vmul.f32 %v3274_v33, %v1871_v9 }
 0x761   :  { %v2126_v32 = vadd.f32 %v2125_v30, %v3582_v12 }
 0x763   :  { %3275 = vtanh.f32 %v2126_v32 }
 0x76d   :  { %v3276_v36 = vpop.eup %3275 }
 0x76e   :  { %v2129_v39 = vmul.f32 %v3276_v36, %v2128_v35 }
 0x770   :  { %v2131_v41 = vadd.f32 %v2130_v40, %v2129_v39 }
 0x772   :  { %v2139_v42 = vrot.slane %v2131_v41, %v3585_v22  ;;  %2991 = vmatmul.mubr.msk.f32.vlgmr.msra.gmra.mrb[24].mxu0 %vm101_vm1, %v2131_v41  ;;  %3002 = vmatmul.mubr.msk.f32.vlgmr.msra.gmra.mrb[24].mxu1 %vm101_vm1, %v2131_v41 }
 0x773   :  { %3184 = vmatpush3.bf16.msra.mxu0 %v3536_v34  ;;  %3012 = vmatprep.mubr.msk.f32.mxu0 %vm3412_vm0, %v3413_v1  ;;  %v2422_v34 = vld [vmem:[#allocation9 + $0x8] sm:$0xff]  ;;  %v2424_v1 = vld [vmem:[#allocation9 + $0x18] sm:$0xff] }
 0x774   :  { %v2140_v43 = vcombine.high %v2139_v42, %v2139_v42  ;;  %v2147_v44 = vrot.slane %v2139_v42, %v3585_v22  ;;  %3185 = vmatprep.subr.bf16.mxu0 %v3411_v0  ;;  %v3188_v47 = vpack.c.bf16 %v2422_v34, %v2421_v46  ;;  %v3192_v50 = vpack.c.bf16 %v2424_v1, %v2423_v49 }
 0x776   :  { %v2154_v45 = vrot.slane %v2140_v43, %v3585_v22  ;;  %2157 = vst.msk [vmem:[#allocation2 + $0x6] sm:$0x1] %vm596_vm2, %v2147_v44  ;;  %3189 = vmatprep.subr.bf16.mxu1 %v3188_v47 }
 0x777   :  { %3187 = vmatpush3.bf16.msra.mxu0 %v3547_v38  ;;  %3191 = vmatpush3.bf16.msra.mxu1 %v3188_v47 }
 0x778   :  { %2158 = vst.msk [vmem:[#allocation2 + $0xe] sm:$0x1] %vm596_vm2, %v2154_v45  ;;  %3193 = vmatprep.subr.bf16.mxu1 %v3192_v50 }
 0x77a   :  { %3013 = vmatmul.mubr.msk.f32.vlgmr.msra.gmra.mrb[26].mxu0 %vm101_vm1, %v2131_v41 }
 0x77b   :  { %3195 = vmatpush3.bf16.msra.mxu1 %v3192_v50 }
 0x845   :  { %v2227_v0 = vpop.f32.mrb[24].mxu0  ;;  %v2297_v51 = vpop.f32.mrb[24].mxu1 }
 0x846   :  { %v2371_v52 = vadd.f32 %v2227_v0, %v3573_v48  ;;  %v2992_v53 = vpop.f32.mrb[25].mxu0  ;;  %v3003_v38 = vpop.f32.mrb[25].mxu1  ;;  %v2378_v55 = vadd.f32 %v2297_v51, %v3576_v57 }
 0x848   :  { %v2572_v54 = vmul.f32 -1.442695, %v2371_v52  ;;  %v2573_v56 = vmul.f32 -1.442695, %v2378_v55 }
 0x84a   :  { %3277 = vpow2.f32 %v2572_v54 }
 0x84b   :  { %3279 = vpow2.f32 %v2573_v56 }
 0x84d   :  { %v2367_v58 = vpop.f32.mrb[26].mxu0 }
 0x84e   :  { %v3014_v59 = vpop.f32.mrb[27].mxu0  ;;  %v2368_v2 = vadd.f32 %v2367_v58, %v3579_v5 }
 0x854   :  { %v3278_v60 = vpop.eup %3277 }
 0x855   :  { %v2375_v61 = vadd.f32 1.0, %v3278_v60  ;;  %v3280_v62 = vpop.eup %3279 }
 0x856   :  { %v2382_v63 = vadd.f32 1.0, %v3280_v62 }
 0x857   :  { %3281 = vrcp.f32 %v2375_v61 }
 0x858   :  { %3283 = vrcp.f32 %v2382_v63 }
 0x861   :  { %v3282_v3 = vpop.eup %3281 }
 0x862   :  { %v2385_v48 = vmul.f32 %v3282_v3, %v2368_v2  ;;  %v3284_v6 = vpop.eup %3283 }
 0x863   :  { %v2388_v57 = vsub.f32 1.0, %v3284_v6  ;;  %v2390_v8 = vmul.f32 %v3284_v6, %v2131_v41 }
 0x864   :  { %v2386_v4 = vadd.f32 %v2385_v48, %v3582_v12 }
 0x866   :  { %3285 = vtanh.f32 %v2386_v4 }
 0x870   :  { %v3286_v7 = vpop.eup %3285 }
 0x871   :  { %v2389_v9 = vmul.f32 %v3286_v7, %v2388_v57 }
 0x873   :  { %v2391_v10 = vadd.f32 %v2390_v8, %v2389_v9 }
 0x875   :  { %v2399_v11 = vrot.slane %v2391_v10, %v3585_v22 }
 0x877   :  { %v2400_v13 = vcombine.high %v2399_v11, %v2399_v11  ;;  %v2407_v14 = vrot.slane %v2399_v11, %v3585_v22 }
 0x879   :  { %v2414_v20 = vrot.slane %v2400_v13, %v3585_v22  ;;  %2417 = vst.msk [vmem:[#allocation2 + $0x7] sm:$0x1] %vm596_vm2, %v2407_v14 }
 0x87b   :  { %2418 = vst.msk [vmem:[#allocation2 + $0xf] sm:$0x1] %vm596_vm2, %v2414_v20 }
 0x880   :  { %v2419_v5 = vld [vmem:[#allocation2] sm:$0xff] }
 0x881   :  { %3023 = vmatprep.mubr.msk.f32.mxu1 %vm101_vm1, %v2419_v5 }
 0x882   :  { %v2420_v12 = vld [vmem:[#allocation2 + $0x8] sm:$0xff] }
 0x883   :  { %3024 = vmatmul.mubr.msk.f32.vlgmr.msra.gmra.mrb[26].mxu1 %vm101_vm1, %v2420_v12 }
 0x956   :  { %v3025_v16 = vpop.f32.mrb[26].mxu1 }
 0x957   :  { %v2510_v17 = vadd.f32 %v3025_v16, %v2574_v15  ;;  %v2504_v18 = vpop.f32.mrb[27].mxu1 }
 0x958   :  { %v2505_v22 = vadd.f32 %v2574_v15, %v2504_v18 }
 0x959   :  { %2514 = vst [vmem:[#allocation11 + $0x8] sm:$0xff] %v2510_v17 }
 0x95a   :  { %2513 = vst [vmem:[#allocation11] sm:$0xff] %v2505_v22 }
 0x95b   :  { %3386 = shalt.err (!%p3383_p8)
}
 0x95c   :  { %s3387_s5 = scalar_lea.hbm %s3814_s6, 256 }
 0x95d   :  { %p3388_p9 = scmp.ne.s32.totalorder %s3814_s6, %s3387_s5  ;;  %p3391_p10 = scmp.lt.u32.totalorder %s3387_s5, %s3814_s6 }
 0x95f   :  { %p3393_p11 = pnand %p3391_p10, %p3388_p9 }
 0x961   :  { %3396 = shalt.err (!%p3393_p11)
}
 0x962   :  { %2526 = dma.vmem_to_hbm [thread:$0]  %s2521_s24, 256, %s3814_s6, [#allocation5], %s3406_s7, %s3406_s7, %s3407_s8  }
 0x963   :  { %3403 = dma.done.wait [#allocation5], 256  }
 0x964   :  { %3404 = vsyncadd [#allocation5], 4294967040 }
 0x965   :  { %2530 = vsyncpa [#allocation4], 1 }
 0x966   :  { %2531 = vsyncpa [#allocation7], 1 }
 0x967   :  { %2532 = vsyncpa [#allocation10], 1 }
 0x968   :  { %2533 = vsyncpa [#allocation5], 1 }

</bundles_post_ra>
